<compile_context>
chip_gen: v6e
topology: v6e:2x2x1
jax: 0.10.0
libtpu: 0.0.40
codegen_flags: <defaults>
</compile_context>

<pallas_src>
import numpy as np
import jax
import jax.numpy as jnp
from jax.experimental import pallas as pl
from jax.experimental.pallas import tpu as pltpu


# --------------------------------------------------------------------------------------
# Generation-aware VMEM sizing (v5e/v6e: 128 MiB per core, v7x: 64 MiB per TensorCore)
# --------------------------------------------------------------------------------------
def _tpu_vmem_capacity_bytes():
    try:
        info = pltpu.get_tpu_info()
        for name in ("vmem_capacity_bytes", "vmem_size_bytes", "vmem_bytes"):
            v = getattr(info, name, None)
            if v:
                return int(v)
    except Exception:
        pass
    return 64 * 1024 * 1024   # conservative fallback (v7x-sized) if the query fails


_VMEM_CAP = _tpu_vmem_capacity_bytes()
_VMEM_LIMIT = int(_VMEM_CAP * 0.78)     # ~100 MiB on 128 MiB parts, ~50 MiB on v7x
_WS_BUDGET = int(_VMEM_CAP * 0.375)     # double-buffered working-set budget for tile/G picks


# --------------------------------------------------------------------------------------
# Kernel 1: prepare_images (fused normalisation + BGR/-0.33 VCN branch + 1/4-res downsample)
# --------------------------------------------------------------------------------------
def _make_prep_kernel(scale, offset, H, W, tile_h):
    """scale = std/255, offset = mean/255 as python floats (compile-time constants)."""
    MEAN_LR = 0.33  # np.asarray([[0.33]*3]).mean(0) in the torch code
    ragged = (H % tile_h) != 0

    def kernel(img_ref, img2_ref, sh_ref, swt_ref, vcn_ref, lq_ref, rq_ref):
        # blocks: img/img2 (1,3,tile_h,W); sh (tile_h/4, tile_h); swt (W, W/4)
        # outputs: vcn (2,1,3,tile_h,W) bf16, lq/rq (1,3,tile_h/4,W/4) f32
        sh = sh_ref[...]
        swt = swt_ref[...]
        if ragged:
            # mask rows past H so garbage in the ragged last block cannot leak (0*NaN=NaN)
            # into the valid rows of the one-hot downsample matmul.
            row = (jax.lax.broadcasted_iota(jnp.int32, (tile_h, W), 0)
                   + pl.program_id(1) * tile_h)
            row_ok = row < H
        for c in range(3):
            s = scale[c]
            m = offset[c]
            oL = img_ref[0, c].astype(jnp.float32) * s + m      # (img*std+mean)/255
            oR = img2_ref[0, c].astype(jnp.float32) * s + m
            vL = oL - MEAN_LR                                   # imgL/imgR = imgo[:, [2,1,0]] - 0.33
            vR = oR - MEAN_LR
            # TODO(synk): imgRAFT (= imgo*2-1) is not materialised — RAFT itself is untranslated.
            vcn_ref[0, 0, 2 - c] = vL.astype(vcn_ref.dtype)     # L image at batch block 0
            vcn_ref[1, 0, 2 - c] = vR.astype(vcn_ref.dtype)     # R image at batch block 1
            if ragged:
                vLd = jnp.where(row_ok, vL, 0.0)
                vRd = jnp.where(row_ok, vR, 0.0)
            else:
                vLd, vRd = vL, vR
            # fused ::4,::4 downsample via one-hot selection matmuls (MXU; free under the DMA)
            lq_ref[0, 2 - c] = jnp.dot(jnp.dot(sh, vLd, preferred_element_type=jnp.float32),
                                       swt, preferred_element_type=jnp.float32)
            rq_ref[0, 2 - c] = jnp.dot(jnp.dot(sh, vRd, preferred_element_type=jnp.float32),
                                       swt, preferred_element_type=jnp.float32)

    return kernel


def _pick_tile_h(H, W, budget_bytes):
    """Largest row tile (multiple of 32, or full H) whose double-buffered set fits the budget."""
    # per full-res row: 2 f32 input rows + 2 bf16 vcn rows + 2 quarter-res f32 rows (1/16 each),
    # all x3 channels, double-buffered.
    per_row = (2 * 3 * W * 4 + 2 * 3 * W * 2 + (2 * 3 * (W // 4) * 4) // 4) * 2
    max_rows = max(8, budget_bytes // max(per_row, 1))
    if max_rows >= H or H <= 32:
        return H                                  # full extent (block == array dim is legal)
    return max(32, (max_rows // 32) * 32)


def _subsample_matrices(tile_h, W):
    th4, wq = tile_h // 4, W // 4
    sh = np.zeros((th4, tile_h), np.float32)
    sh[np.arange(th4), np.arange(th4) * 4] = 1.0
    swt = np.zeros((W, wq), np.float32)
    swt[np.arange(wq) * 4, np.arange(wq)] = 1.0
    return jnp.asarray(sh), jnp.asarray(swt)


def prepare_images_pallas(img, img2, scale, offset):
    """Returns (vcn2, lq, rq):
        vcn2 : (2, B, 3, H, W) bf16 — [0] = imgL, [1] = imgR   (imgVCN == vcn2.reshape(2B,3,H,W))
        lq,rq: (B, 3, H/4, W/4) f32 — fused ::4 downsample of vcn2[0] / vcn2[1]."""
    B, C, H, W = img.shape
    assert C == 3 and H % 4 == 0 and W % 4 == 0
    tile_h = _pick_tile_h(H, W, _WS_BUDGET)
    th4, hq, wq = tile_h // 4, H // 4, W // 4
    grid = (B, pl.cdiv(H, tile_h))
    sh, swt = _subsample_matrices(tile_h, W)

    in_blk = pl.BlockSpec((1, 3, tile_h, W), lambda b, t: (b, 0, t, 0))
    in_specs = [
        in_blk,
        in_blk,
        pl.BlockSpec((th4, tile_h), lambda b, t: (0, 0)),
        pl.BlockSpec((W, wq), lambda b, t: (0, 0)),
    ]
    out_shapes = (
        jax.ShapeDtypeStruct((2, B, 3, H, W), jnp.bfloat16),   # vcn (bf16: write-BW bound)
        jax.ShapeDtypeStruct((B, 3, hq, wq), jnp.float32),     # lq
        jax.ShapeDtypeStruct((B, 3, hq, wq), jnp.float32),     # rq
    )
    out_specs = (
        pl.BlockSpec((2, 1, 3, tile_h, W), lambda b, t: (0, b, 0, t, 0)),
        pl.BlockSpec((1, 3, th4, wq), lambda b, t: (b, 0, t, 0)),
        pl.BlockSpec((1, 3, th4, wq), lambda b, t: (b, 0, t, 0)),
    )
    kernel = _make_prep_kernel(scale, offset, H, W, tile_h)
    return pl.pallas_call(
        kernel,
        out_shape=out_shapes,
        grid=grid,
        in_specs=in_specs,
        out_specs=out_specs,
        compiler_params=pltpu.CompilerParams(
            dimension_semantics=("parallel", "parallel"),
            vmem_limit_bytes=_VMEM_LIMIT),
    )(img, img2, sh, swt)


# --------------------------------------------------------------------------------------
# Kernel 2: stand-in motion cost volume (zero-padded 3x3 local correlation, 1/4 res)
# --------------------------------------------------------------------------------------
def _corr_cost_kernel(l_ref, rp_ref, o_ref):
    # l_ref : (1, C, hq, wq), rp_ref : (1, C, hq+2, wq+2) zero-padded, o_ref : (1, 9, hq, wq)
    _, C, hq, wq = l_ref.shape
    l = l_ref[0].astype(jnp.float32)                      # (C, hq, wq)
    k = 0
    for dy in range(3):
        for dx in range(3):
            # shifted window read from the zero-padded VMEM block (correct borders)
            r = rp_ref[0, :, dy:dy + hq, dx:dx + wq].astype(jnp.float32)
            o_ref[0, k] = jnp.sum(l * r, axis=0)
            k += 1


def correlation_cost_pallas(lq, rq):
    # Quarter-resolution inputs, so the host-side zero pad is a negligible HBM round trip.
    # TODO(synk): at B == 1 on v7x this single-axis grid leaves one TensorCore idle; a row-tiled
    #             grid with a resident rq block would restore megacore sharding.
    B, C, hq, wq = lq.shape
    rq_pad = jnp.pad(rq, ((0, 0), (0, 0), (1, 1), (1, 1)))
    return pl.pallas_call(
        _corr_cost_kernel,
        out_shape=jax.ShapeDtypeStruct((B, 9, hq, wq), jnp.float32),
        grid=(B,),
        in_specs=[
            pl.BlockSpec((1, C, hq, wq), lambda b: (b, 0, 0, 0)),
            pl.BlockSpec((1, C, hq + 2, wq + 2), lambda b: (b, 0, 0, 0)),
        ],
        out_specs=pl.BlockSpec((1, 9, hq, wq), lambda b: (b, 0, 0, 0)),
        compiler_params=pltpu.CompilerParams(
            dimension_semantics=("parallel",),
            vmem_limit_bytes=_VMEM_LIMIT),
    )(lq, rq_pad)


# --------------------------------------------------------------------------------------
# Kernel 3: bilinear (align_corners=True) resize as two MXU matmuls per map (bf16 operands),
#           G maps batched per grid step, padding-mask multiply fused.
# --------------------------------------------------------------------------------------
def _bilinear_matrix(n_out, n_in):
    m = np.zeros((n_out, n_in), np.float32)
    if n_out == 1 or n_in == 1:
        m[:, 0] = 1.0
        return m
    src = np.arange(n_out) * (n_in - 1) / (n_out - 1)
    i0 = np.floor(src).astype(np.int64)
    i1 = np.minimum(i0 + 1, n_in - 1)
    f = (src - i0).astype(np.float32)
    m[np.arange(n_out), i0] += 1.0 - f
    m[np.arange(n_out), i1] += f
    return m


def _make_resize_kernel(G, h, w, H_out, W_out, width_first, with_mask):
    # batched width-first first matmul only when the sublane merge (G,h,w)->(G*h,w) is free
    fuse = width_first and G > 1 and (h % 8 == 0)

    def kernel(*refs):
        if with_mask:
            x_ref, wh_ref, wwt_ref, m_ref, o_ref = refs
            mask = m_ref[0].astype(jnp.float32)               # (H_out, W_out)
        else:
            x_ref, wh_ref, wwt_ref, o_ref = refs
            mask = None
        wh = wh_ref[...]                                      # (H_out, h) bf16
        wwt = wwt_ref[...]                                    # (w, W_out) bf16
        x = x_ref[0]                                          # (G, h, w)
        if fuse:
            t = jnp.dot(x.reshape(G * h, w).astype(jnp.bfloat16), wwt,
                        preferred_element_type=jnp.float32)
            t = t.reshape(G, h, W_out)
        for g in range(G):
            if fuse:
                og = jnp.dot(wh, t[g].astype(jnp.bfloat16), preferred_element_type=jnp.float32)
            elif width_first:
                tg = jnp.dot(x[g].astype(jnp.bfloat16), wwt, preferred_element_type=jnp.float32)
                og = jnp.dot(wh, tg.astype(jnp.bfloat16), preferred_element_type=jnp.float32)
            else:
                tg = jnp.dot(wh, x[g].astype(jnp.bfloat16), preferred_element_type=jnp.float32)
                og = jnp.dot(tg.astype(jnp.bfloat16), wwt, preferred_element_type=jnp.float32)
            if mask is not None:
                og = og * mask
            o_ref[0, g] = og.astype(o_ref.dtype)

    return kernel


def bilinear_resize_pallas(x, H_out, W_out, mask=None):
    """x: (B, C, h, w) -> (B, C, H_out, W_out), optional per-batch (B,H_out,W_out) 0/1 mask."""
    B, C, h, w = x.shape
    wh = jnp.asarray(_bilinear_matrix(H_out, h), dtype=jnp.bfloat16)
    wwt = jnp.asarray(_bilinear_matrix(W_out, w).T, dtype=jnp.bfloat16)

    # adaptive matmul ordering: pick the order with fewer MXU FLOPs
    width_first = h * W_out * (w + H_out) <= H_out * w * (h + W_out)

    # pick G (maps per grid step) so the double-buffered working set fits the gen-aware budget
    G = 1
    for cand in range(C, 0, -1):
        if C % cand:
            continue
        per_step = (cand * h * w + cand * H_out * W_out) * 4 * 2      # in + out blocks (f32)
        per_step += (H_out * h + w * W_out) * 2 * 2                   # bf16 weight matrices
        per_step += cand * max(h * W_out, H_out * w) * 4              # intermediate
        per_step += cand * h * w * 2                                  # bf16 copy of x
        if mask is not None:
            per_step += H_out * W_out * 4 * 2
        if per_step <= _WS_BUDGET:
            G = cand
            break

    grid = (B, C // G)
    in_specs = [
        pl.BlockSpec((1, G, h, w), lambda b, g: (b, g, 0, 0)),
        pl.BlockSpec((H_out, h), lambda b, g: (0, 0)),
        pl.BlockSpec((w, W_out), lambda b, g: (0, 0)),
    ]
    args = [x, wh, wwt]
    if mask is not None:
        in_specs.append(pl.BlockSpec((1, H_out, W_out), lambda b, g: (b, 0, 0)))
        args.append(mask)

    kernel = _make_resize_kernel(G, h, w, H_out, W_out, width_first, mask is not None)
    return pl.pallas_call(
        kernel,
        out_shape=jax.ShapeDtypeStruct((B, C, H_out, W_out), jnp.float32),
        grid=grid,
        in_specs=in_specs,
        out_specs=pl.BlockSpec((1, G, H_out, W_out), lambda b, g: (b, g, 0, 0)),
        compiler_params=pltpu.CompilerParams(
            dimension_semantics=("parallel", "parallel"),
            vmem_limit_bytes=_VMEM_LIMIT),
    )(*args)


# --------------------------------------------------------------------------------------
# RAFTplus (deterministic forward-pass pieces)
# --------------------------------------------------------------------------------------
class RAFTplusPallas:
    def __init__(self, max_disp, fac, exp_unc, samples_per_gpu, img_scale,
                 img_norm_cfg, **kwargs):
        self.md = [int(4 * (max_disp / 256)), 4, 4, 4, 4]
        self.fac = int(fac)
        self.orig_size = [samples_per_gpu, img_scale[0], img_scale[1]]
        max_h = int(np.ceil(img_scale[1] / 64) * 64)
        max_w = int(np.ceil(img_scale[0] / 64) * 64)
        self.new_size = [samples_per_gpu, max_w, max_h]
        self.add_padding_channel = kwargs.get('add_padding_channel', False)
        self.raft_iters = kwargs.get('iters', 24)
        self.img_norm_cfg = img_norm_cfg
        # fold 1/255 into mean/std once on the host; baked into the kernel as constants
        self.scale = tuple(float(s) / 255.0 for s in img_norm_cfg['std'])
        self.offset = tuple(float(m) / 255.0 for m in img_norm_cfg['mean'])
        self.pad_h = 0
        self.pad_w = 0
        # TODO(synk): RAFT / MiDaS / affine_exp / depth_change_net weights are external
        # (torch.hub or undefined in the source) and are not instantiated here.

    def forward(self, features, img, img2, img_metas=None, padding_mask=None,
                output_cost_only=False, **kwargs):
        bs = len(img_metas)
        ori_shape = img_metas[0]['ori_shape']
        pad_shape = img_metas[0]['pad_shape']
        self.new_size = [bs, pad_shape[1], pad_shape[0]]
        self.orig_size = [bs, ori_shape[1], ori_shape[0]]
        self.pad_h = pad_shape[0] - ori_shape[0]
        self.pad_w = pad_shape[1] - ori_shape[1]

        # ---------------- prepare_images (tiled Pallas kernel, fused 1/4-res downsample) ---
        vcn2, lq, rq = prepare_images_pallas(img, img2, self.scale, self.offset)
        # imgVCN == vcn2.reshape(2B,3,H,W) (no concatenate pass); consumed only by the
        # untranslated VCN / optical-expansion path.
        # TODO(synk): imgRAFT (= imgo*2-1) not materialised — RAFT itself is untranslated.
        # TODO(synk): kornia_crop_resize is identity here (pad_h == pad_w == 0, same size).

        # ---------------- raftplus_forward core ------------------------------------
        # TODO(synk): RAFT flow, MiDaS depth, optical expansion and compute_mcv are
        # external/undefined; stand-in cost volume = zero-padded 3x3 local correlation at 1/4 res.
        costs_q = correlation_cost_pallas(lq, rq)           # (B, 9, H/4, W/4)

        # ---------------- prepare_outputs (mask multiply fused into the resize kernel) -----
        h = self.orig_size[2]
        w = self.orig_size[1]
        mask01 = None
        if padding_mask is not None:
            mask01 = (padding_mask != 0).astype(jnp.float32)     # costs[pc == 0] = 0
        costs = bilinear_resize_pallas(costs_q, h, w, mask=mask01)   # bilinear, align_corners=True
        costs = jnp.pad(costs, ((0, 0), (0, 0), (0, self.pad_h), (0, self.pad_w)))
        if self.add_padding_channel:
            add_c = jnp.ones((costs.shape[0], 1, h, w), costs.dtype)
            add_c = jnp.pad(add_c, ((0, 0), (0, 0), (0, self.pad_h), (0, self.pad_w)),
                            constant_values=-1.0)
            costs = jnp.concatenate([costs, add_c], axis=1)
        if output_cost_only:
            return None, costs

        if features is not None:
            out_feats = []
            for f in features:
                if f.shape[2:] == costs.shape[2:]:
                    c = costs
                else:  # F.interpolate(..., mode='nearest') with exactly-divisible sizes
                    sh = costs.shape[2] // f.shape[2]
                    sw = costs.shape[3] // f.shape[3]
                    c = costs[:, :, ::sh, ::sw]
                out_feats.append(jnp.concatenate([f, c], axis=1))
        else:
            out_feats = []
            for i in range(5):
                coef = 2 ** (i + 2)
                out_feats.append(costs[:, :, ::coef, ::coef])   # nearest downsample
        return out_feats, costs


# --------------------------------------------------------------------------------------
if __name__ == "__main__":
    key = jax.random.PRNGKey(0)
    B, C, H, W = 2, 3, 64, 64
    k1, k2 = jax.random.split(key)
    # img / img2 are the (already mean/std-normalised) NCHW inputs the detector would pass in.
    img = jax.random.normal(k1, (B, C, H, W), jnp.float32)
    img2 = jax.random.normal(k2, (B, C, H, W), jnp.float32)
    padding_mask = jnp.ones((B, H, W), jnp.float32)

    model = RAFTplusPallas(
        max_disp=256, fac=1, exp_unc=False, samples_per_gpu=B, img_scale=(W, H),
        img_norm_cfg=dict(mean=[123.675, 116.28, 103.53], std=[58.395, 57.12, 57.375]),
    )
    img_metas = [dict(ori_shape=(H, W, 3), pad_shape=(H, W, 3)) for _ in range(B)]

    outputs, costs = model.forward(None, img, img2, img_metas=img_metas,
                                   padding_mask=padding_mask)
    costs = jax.block_until_ready(costs)
    outputs = [jax.block_until_ready(f) for f in outputs]

    # ---- shape / finiteness checks ----
    assert costs.shape == (B, 9, H, W), costs.shape
    assert len(outputs) == 5 and outputs[0].shape == (B, 9, H // 4, W // 4)
    assert bool(jnp.all(jnp.isfinite(costs)))

    # ---- correctness checks against pure-JAX references ----
    mean = jnp.asarray([123.675, 116.28, 103.53], jnp.float32).reshape(1, 3, 1, 1)
    std = jnp.asarray([58.395, 57.12, 57.375], jnp.float32).reshape(1, 3, 1, 1)
    oL = (img * std + mean) / 255.0
    oR = (img2 * std + mean) / 255.0
    vcn2, lq, rq = prepare_images_pallas(img, img2, model.scale, model.offset)
    vcnL = vcn2[0].astype(jnp.float32)
    vcnR = vcn2[1].astype(jnp.float32)
    refL = oL[:, ::-1] - 0.33
    refR = oR[:, ::-1] - 0.33
    # vcn is emitted in bf16 (bandwidth), quarter-res maps via bf16-pass MXU selection -> ~1e-2 tol
    assert float(jnp.max(jnp.abs(vcnL - refL))) < 2e-2
    assert float(jnp.max(jnp.abs(vcnR - refR))) < 2e-2
    assert float(jnp.max(jnp.abs(lq - refL[:, :, ::4, ::4]))) < 2e-2
    assert float(jnp.max(jnp.abs(rq - refR[:, :, ::4, ::4]))) < 2e-2

    cq = correlation_cost_pallas(lq, rq)
    rqp = jnp.pad(rq, ((0, 0), (0, 0), (1, 1), (1, 1)))
    hq, wq = lq.shape[2], lq.shape[3]
    k = 0
    for dy in range(3):
        for dx in range(3):
            ref_k = jnp.sum(lq * rqp[:, :, dy:dy + hq, dx:dx + wq], axis=1)
            assert float(jnp.max(jnp.abs(cq[:, k] - ref_k))) < 1e-4
            k += 1

    wh_np = jnp.asarray(_bilinear_matrix(H, hq))
    ww_np = jnp.asarray(_bilinear_matrix(W, wq))
    ref_costs = jnp.einsum('oh,bchw,pw->bcop', wh_np, cq, ww_np)   # mask==1, pad==0 in demo
    assert float(jnp.max(jnp.abs(costs - ref_costs))) < 1e-1       # loose: bf16 MXU operands

    print("KERNEL_OK")
</pallas_src>

<mosaic_0001>
module attributes {stable_mosaic.version = 11 : i64} {
  func.func @kernel(%arg0: i32, %arg1: i32, %arg2: memref<1x3x64x64xf32, #tpu.memory_space<vmem>>, %arg3: memref<1x3x64x64xf32, #tpu.memory_space<vmem>>, %arg4: memref<16x64xf32, #tpu.memory_space<vmem>>, %arg5: memref<64x16xf32, #tpu.memory_space<vmem>>, %arg6: memref<2x1x3x64x64xbf16, #tpu.memory_space<vmem>>, %arg7: memref<1x3x16x16xf32, #tpu.memory_space<vmem>>, %arg8: memref<1x3x16x16xf32, #tpu.memory_space<vmem>>) attributes {dimension_semantics = [#tpu.dimension_semantics<parallel>, #tpu.dimension_semantics<parallel>], iteration_bounds = array<i64: 2, 1>, scalar_prefetch = 0 : i64, scratch_operands = 0 : i64, tpu.core_type = #tpu.core_type<tc>, window_params = [{transform_indices = @transform_0, window_bounds = array<i64: 1, 3, 64, 64>}, {transform_indices = @transform_1, window_bounds = array<i64: 1, 3, 64, 64>}, {pipeline_mode = #tpu.pipeline_mode<synchronous>, transform_indices = @transform_2, window_bounds = array<i64: 16, 64>}, {pipeline_mode = #tpu.pipeline_mode<synchronous>, transform_indices = @transform_3, window_bounds = array<i64: 64, 16>}, {transform_indices = @transform_4, window_bounds = array<i64: 2, 1, 3, 64, 64>}, {transform_indices = @transform_5, window_bounds = array<i64: 1, 3, 16, 16>}, {transform_indices = @transform_6, window_bounds = array<i64: 1, 3, 16, 16>}]} {
    %c0 = arith.constant 0 : index
    %c0_0 = arith.constant 0 : index
    %0 = vector.load %arg4[%c0, %c0_0] : memref<16x64xf32, #tpu.memory_space<vmem>>, vector<16x64xf32>
    %c0_1 = arith.constant 0 : index
    %c0_2 = arith.constant 0 : index
    %1 = vector.load %arg5[%c0_1, %c0_2] : memref<64x16xf32, #tpu.memory_space<vmem>>, vector<64x16xf32>
    %c0_3 = arith.constant 0 : index
    %c0_4 = arith.constant 0 : index
    %c0_5 = arith.constant 0 : index
    %c0_6 = arith.constant 0 : index
    %2 = vector.load %arg2[%c0_3, %c0_4, %c0_5, %c0_6] : memref<1x3x64x64xf32, #tpu.memory_space<vmem>>, vector<1x1x64x64xf32>
    %3 = vector.shape_cast %2 : vector<1x1x64x64xf32> to vector<64x64xf32>
    %cst = arith.constant 2.290000e-01 : f32
    %4 = vector.broadcast %cst : f32 to vector<64x64xf32>
    %5 = arith.mulf %3, %4 : vector<64x64xf32>
    %cst_7 = arith.constant 4.850000e-01 : f32
    %6 = vector.broadcast %cst_7 : f32 to vector<64x64xf32>
    %7 = arith.addf %5, %6 : vector<64x64xf32>
    %c0_8 = arith.constant 0 : index
    %c0_9 = arith.constant 0 : index
    %c0_10 = arith.constant 0 : index
    %c0_11 = arith.constant 0 : index
    %8 = vector.load %arg3[%c0_8, %c0_9, %c0_10, %c0_11] : memref<1x3x64x64xf32, #tpu.memory_space<vmem>>, vector<1x1x64x64xf32>
    %9 = vector.shape_cast %8 : vector<1x1x64x64xf32> to vector<64x64xf32>
    %cst_12 = arith.constant 2.290000e-01 : f32
    %10 = vector.broadcast %cst_12 : f32 to vector<64x64xf32>
    %11 = arith.mulf %9, %10 : vector<64x64xf32>
    %cst_13 = arith.constant 4.850000e-01 : f32
    %12 = vector.broadcast %cst_13 : f32 to vector<64x64xf32>
    %13 = arith.addf %11, %12 : vector<64x64xf32>
    %cst_14 = arith.constant 3.300000e-01 : f32
    %14 = vector.broadcast %cst_14 : f32 to vector<64x64xf32>
    %15 = arith.subf %7, %14 : vector<64x64xf32>
    %cst_15 = arith.constant 3.300000e-01 : f32
    %16 = vector.broadcast %cst_15 : f32 to vector<64x64xf32>
    %17 = arith.subf %13, %16 : vector<64x64xf32>
    %18 = arith.truncf %15 : vector<64x64xf32> to vector<64x64xbf16>
    %c0_16 = arith.constant 0 : index
    %c0_17 = arith.constant 0 : index
    %c2 = arith.constant 2 : index
    %c0_18 = arith.constant 0 : index
    %c0_19 = arith.constant 0 : index
    %19 = vector.load %arg6[%c0_16, %c0_17, %c2, %c0_18, %c0_19] : memref<2x1x3x64x64xbf16, #tpu.memory_space<vmem>>, vector<1x1x1x64x64xbf16>
    %20 = vector.shape_cast %19 : vector<1x1x1x64x64xbf16> to vector<64x64xbf16>
    %21 = vector.shape_cast %18 : vector<64x64xbf16> to vector<1x1x1x64x64xbf16>
    tpu.vector_store %arg6[%c0_16, %c0_17, %c2, %c0_18, %c0_19], %21 {strides = array<i32>} : memref<2x1x3x64x64xbf16, #tpu.memory_space<vmem>>, vector<1x1x1x64x64xbf16>,
    %22 = arith.truncf %17 : vector<64x64xf32> to vector<64x64xbf16>
    %c1 = arith.constant 1 : index
    %c0_20 = arith.constant 0 : index
    %c2_21 = arith.constant 2 : index
    %c0_22 = arith.constant 0 : index
    %c0_23 = arith.constant 0 : index
    %23 = vector.load %arg6[%c1, %c0_20, %c2_21, %c0_22, %c0_23] : memref<2x1x3x64x64xbf16, #tpu.memory_space<vmem>>, vector<1x1x1x64x64xbf16>
    %24 = vector.shape_cast %23 : vector<1x1x1x64x64xbf16> to vector<64x64xbf16>
    %25 = vector.shape_cast %22 : vector<64x64xbf16> to vector<1x1x1x64x64xbf16>
    tpu.vector_store %arg6[%c1, %c0_20, %c2_21, %c0_22, %c0_23], %25 {strides = array<i32>} : memref<2x1x3x64x64xbf16, #tpu.memory_space<vmem>>, vector<1x1x1x64x64xbf16>,
    %cst_24 = arith.constant dense<0.000000e+00> : vector<16x64xf32>
    %26 = tpu.matmul %0, %15, %cst_24 {dimension_numbers = #tpu.dot_dimension_numbers<[1], [0], [0], [1], [0, 0, 1, 1], [], []>} : vector<16x64xf32>, vector<64x64xf32>, vector<16x64xf32> -> vector<16x64xf32>
    %cst_25 = arith.constant dense<0.000000e+00> : vector<16x16xf32>
    %27 = tpu.matmul %26, %1, %cst_25 {dimension_numbers = #tpu.dot_dimension_numbers<[1], [0], [0], [1], [0, 0, 1, 1], [], []>} : vector<16x64xf32>, vector<64x16xf32>, vector<16x16xf32> -> vector<16x16xf32>
    %c0_26 = arith.constant 0 : index
    %c2_27 = arith.constant 2 : index
    %c0_28 = arith.constant 0 : index
    %c0_29 = arith.constant 0 : index
    %28 = vector.load %arg7[%c0_26, %c2_27, %c0_28, %c0_29] : memref<1x3x16x16xf32, #tpu.memory_space<vmem>>, vector<1x1x16x16xf32>
    %29 = vector.shape_cast %28 : vector<1x1x16x16xf32> to vector<16x16xf32>
    %30 = vector.shape_cast %27 : vector<16x16xf32> to vector<1x1x16x16xf32>
    tpu.vector_store %arg7[%c0_26, %c2_27, %c0_28, %c0_29], %30 {strides = array<i32>} : memref<1x3x16x16xf32, #tpu.memory_space<vmem>>, vector<1x1x16x16xf32>,
    %cst_30 = arith.constant dense<0.000000e+00> : vector<16x64xf32>
    %31 = tpu.matmul %0, %17, %cst_30 {dimension_numbers = #tpu.dot_dimension_numbers<[1], [0], [0], [1], [0, 0, 1, 1], [], []>} : vector<16x64xf32>, vector<64x64xf32>, vector<16x64xf32> -> vector<16x64xf32>
    %cst_31 = arith.constant dense<0.000000e+00> : vector<16x16xf32>
    %32 = tpu.matmul %31, %1, %cst_31 {dimension_numbers = #tpu.dot_dimension_numbers<[1], [0], [0], [1], [0, 0, 1, 1], [], []>} : vector<16x64xf32>, vector<64x16xf32>, vector<16x16xf32> -> vector<16x16xf32>
    %c0_32 = arith.constant 0 : index
    %c2_33 = arith.constant 2 : index
    %c0_34 = arith.constant 0 : index
    %c0_35 = arith.constant 0 : index
    %33 = vector.load %arg8[%c0_32, %c2_33, %c0_34, %c0_35] : memref<1x3x16x16xf32, #tpu.memory_space<vmem>>, vector<1x1x16x16xf32>
    %34 = vector.shape_cast %33 : vector<1x1x16x16xf32> to vector<16x16xf32>
    %35 = vector.shape_cast %32 : vector<16x16xf32> to vector<1x1x16x16xf32>
    tpu.vector_store %arg8[%c0_32, %c2_33, %c0_34, %c0_35], %35 {strides = array<i32>} : memref<1x3x16x16xf32, #tpu.memory_space<vmem>>, vector<1x1x16x16xf32>,
    %c0_36 = arith.constant 0 : index
    %c1_37 = arith.constant 1 : index
    %c0_38 = arith.constant 0 : index
    %c0_39 = arith.constant 0 : index
    %36 = vector.load %arg2[%c0_36, %c1_37, %c0_38, %c0_39] : memref<1x3x64x64xf32, #tpu.memory_space<vmem>>, vector<1x1x64x64xf32>
    %37 = vector.shape_cast %36 : vector<1x1x64x64xf32> to vector<64x64xf32>
    %cst_40 = arith.constant 2.240000e-01 : f32
    %38 = vector.broadcast %cst_40 : f32 to vector<64x64xf32>
    %39 = arith.mulf %37, %38 : vector<64x64xf32>
    %cst_41 = arith.constant 4.560000e-01 : f32
    %40 = vector.broadcast %cst_41 : f32 to vector<64x64xf32>
    %41 = arith.addf %39, %40 : vector<64x64xf32>
    %c0_42 = arith.constant 0 : index
    %c1_43 = arith.constant 1 : index
    %c0_44 = arith.constant 0 : index
    %c0_45 = arith.constant 0 : index
    %42 = vector.load %arg3[%c0_42, %c1_43, %c0_44, %c0_45] : memref<1x3x64x64xf32, #tpu.memory_space<vmem>>, vector<1x1x64x64xf32>
    %43 = vector.shape_cast %42 : vector<1x1x64x64xf32> to vector<64x64xf32>
    %cst_46 = arith.constant 2.240000e-01 : f32
    %44 = vector.broadcast %cst_46 : f32 to vector<64x64xf32>
    %45 = arith.mulf %43, %44 : vector<64x64xf32>
    %cst_47 = arith.constant 4.560000e-01 : f32
    %46 = vector.broadcast %cst_47 : f32 to vector<64x64xf32>
    %47 = arith.addf %45, %46 : vector<64x64xf32>
    %cst_48 = arith.constant 3.300000e-01 : f32
    %48 = vector.broadcast %cst_48 : f32 to vector<64x64xf32>
    %49 = arith.subf %41, %48 : vector<64x64xf32>
    %cst_49 = arith.constant 3.300000e-01 : f32
    %50 = vector.broadcast %cst_49 : f32 to vector<64x64xf32>
    %51 = arith.subf %47, %50 : vector<64x64xf32>
    %52 = arith.truncf %49 : vector<64x64xf32> to vector<64x64xbf16>
    %c0_50 = arith.constant 0 : index
    %c0_51 = arith.constant 0 : index
    %c1_52 = arith.constant 1 : index
    %c0_53 = arith.constant 0 : index
    %c0_54 = arith.constant 0 : index
    %53 = vector.load %arg6[%c0_50, %c0_51, %c1_52, %c0_53, %c0_54] : memref<2x1x3x64x64xbf16, #tpu.memory_space<vmem>>, vector<1x1x1x64x64xbf16>
    %54 = vector.shape_cast %53 : vector<1x1x1x64x64xbf16> to vector<64x64xbf16>
    %55 = vector.shape_cast %52 : vector<64x64xbf16> to vector<1x1x1x64x64xbf16>
    tpu.vector_store %arg6[%c0_50, %c0_51, %c1_52, %c0_53, %c0_54], %55 {strides = array<i32>} : memref<2x1x3x64x64xbf16, #tpu.memory_space<vmem>>, vector<1x1x1x64x64xbf16>,
    %56 = arith.truncf %51 : vector<64x64xf32> to vector<64x64xbf16>
    %c1_55 = arith.constant 1 : index
    %c0_56 = arith.constant 0 : index
    %c1_57 = arith.constant 1 : index
    %c0_58 = arith.constant 0 : index
    %c0_59 = arith.constant 0 : index
    %57 = vector.load %arg6[%c1_55, %c0_56, %c1_57, %c0_58, %c0_59] : memref<2x1x3x64x64xbf16, #tpu.memory_space<vmem>>, vector<1x1x1x64x64xbf16>
    %58 = vector.shape_cast %57 : vector<1x1x1x64x64xbf16> to vector<64x64xbf16>
    %59 = vector.shape_cast %56 : vector<64x64xbf16> to vector<1x1x1x64x64xbf16>
    tpu.vector_store %arg6[%c1_55, %c0_56, %c1_57, %c0_58, %c0_59], %59 {strides = array<i32>} : memref<2x1x3x64x64xbf16, #tpu.memory_space<vmem>>, vector<1x1x1x64x64xbf16>,
    %cst_60 = arith.constant dense<0.000000e+00> : vector<16x64xf32>
    %60 = tpu.matmul %0, %49, %cst_60 {dimension_numbers = #tpu.dot_dimension_numbers<[1], [0], [0], [1], [0, 0, 1, 1], [], []>} : vector<16x64xf32>, vector<64x64xf32>, vector<16x64xf32> -> vector<16x64xf32>
    %cst_61 = arith.constant dense<0.000000e+00> : vector<16x16xf32>
    %61 = tpu.matmul %60, %1, %cst_61 {dimension_numbers = #tpu.dot_dimension_numbers<[1], [0], [0], [1], [0, 0, 1, 1], [], []>} : vector<16x64xf32>, vector<64x16xf32>, vector<16x16xf32> -> vector<16x16xf32>
    %c0_62 = arith.constant 0 : index
    %c1_63 = arith.constant 1 : index
    %c0_64 = arith.constant 0 : index
    %c0_65 = arith.constant 0 : index
    %62 = vector.load %arg7[%c0_62, %c1_63, %c0_64, %c0_65] : memref<1x3x16x16xf32, #tpu.memory_space<vmem>>, vector<1x1x16x16xf32>
    %63 = vector.shape_cast %62 : vector<1x1x16x16xf32> to vector<16x16xf32>
    %64 = vector.shape_cast %61 : vector<16x16xf32> to vector<1x1x16x16xf32>
    tpu.vector_store %arg7[%c0_62, %c1_63, %c0_64, %c0_65], %64 {strides = array<i32>} : memref<1x3x16x16xf32, #tpu.memory_space<vmem>>, vector<1x1x16x16xf32>,
    %cst_66 = arith.constant dense<0.000000e+00> : vector<16x64xf32>
    %65 = tpu.matmul %0, %51, %cst_66 {dimension_numbers = #tpu.dot_dimension_numbers<[1], [0], [0], [1], [0, 0, 1, 1], [], []>} : vector<16x64xf32>, vector<64x64xf32>, vector<16x64xf32> -> vector<16x64xf32>
    %cst_67 = arith.constant dense<0.000000e+00> : vector<16x16xf32>
    %66 = tpu.matmul %65, %1, %cst_67 {dimension_numbers = #tpu.dot_dimension_numbers<[1], [0], [0], [1], [0, 0, 1, 1], [], []>} : vector<16x64xf32>, vector<64x16xf32>, vector<16x16xf32> -> vector<16x16xf32>
    %c0_68 = arith.constant 0 : index
    %c1_69 = arith.constant 1 : index
    %c0_70 = arith.constant 0 : index
    %c0_71 = arith.constant 0 : index
    %67 = vector.load %arg8[%c0_68, %c1_69, %c0_70, %c0_71] : memref<1x3x16x16xf32, #tpu.memory_space<vmem>>, vector<1x1x16x16xf32>
    %68 = vector.shape_cast %67 : vector<1x1x16x16xf32> to vector<16x16xf32>
    %69 = vector.shape_cast %66 : vector<16x16xf32> to vector<1x1x16x16xf32>
    tpu.vector_store %arg8[%c0_68, %c1_69, %c0_70, %c0_71], %69 {strides = array<i32>} : memref<1x3x16x16xf32, #tpu.memory_space<vmem>>, vector<1x1x16x16xf32>,
    %c0_72 = arith.constant 0 : index
    %c2_73 = arith.constant 2 : index
    %c0_74 = arith.constant 0 : index
    %c0_75 = arith.constant 0 : index
    %70 = vector.load %arg2[%c0_72, %c2_73, %c0_74, %c0_75] : memref<1x3x64x64xf32, #tpu.memory_space<vmem>>, vector<1x1x64x64xf32>
    %71 = vector.shape_cast %70 : vector<1x1x64x64xf32> to vector<64x64xf32>
    %cst_76 = arith.constant 2.250000e-01 : f32
    %72 = vector.broadcast %cst_76 : f32 to vector<64x64xf32>
    %73 = arith.mulf %71, %72 : vector<64x64xf32>
    %cst_77 = arith.constant 4.060000e-01 : f32
    %74 = vector.broadcast %cst_77 : f32 to vector<64x64xf32>
    %75 = arith.addf %73, %74 : vector<64x64xf32>
    %c0_78 = arith.constant 0 : index
    %c2_79 = arith.constant 2 : index
    %c0_80 = arith.constant 0 : index
    %c0_81 = arith.constant 0 : index
    %76 = vector.load %arg3[%c0_78, %c2_79, %c0_80, %c0_81] : memref<1x3x64x64xf32, #tpu.memory_space<vmem>>, vector<1x1x64x64xf32>
    %77 = vector.shape_cast %76 : vector<1x1x64x64xf32> to vector<64x64xf32>
    %cst_82 = arith.constant 2.250000e-01 : f32
    %78 = vector.broadcast %cst_82 : f32 to vector<64x64xf32>
    %79 = arith.mulf %77, %78 : vector<64x64xf32>
    %cst_83 = arith.constant 4.060000e-01 : f32
    %80 = vector.broadcast %cst_83 : f32 to vector<64x64xf32>
    %81 = arith.addf %79, %80 : vector<64x64xf32>
    %cst_84 = arith.constant 3.300000e-01 : f32
    %82 = vector.broadcast %cst_84 : f32 to vector<64x64xf32>
    %83 = arith.subf %75, %82 : vector<64x64xf32>
    %cst_85 = arith.constant 3.300000e-01 : f32
    %84 = vector.broadcast %cst_85 : f32 to vector<64x64xf32>
    %85 = arith.subf %81, %84 : vector<64x64xf32>
    %86 = arith.truncf %83 : vector<64x64xf32> to vector<64x64xbf16>
    %c0_86 = arith.constant 0 : index
    %c0_87 = arith.constant 0 : index
    %c0_88 = arith.constant 0 : index
    %c0_89 = arith.constant 0 : index
    %c0_90 = arith.constant 0 : index
    %87 = vector.load %arg6[%c0_86, %c0_87, %c0_88, %c0_89, %c0_90] : memref<2x1x3x64x64xbf16, #tpu.memory_space<vmem>>, vector<1x1x1x64x64xbf16>
    %88 = vector.shape_cast %87 : vector<1x1x1x64x64xbf16> to vector<64x64xbf16>
    %89 = vector.shape_cast %86 : vector<64x64xbf16> to vector<1x1x1x64x64xbf16>
    tpu.vector_store %arg6[%c0_86, %c0_87, %c0_88, %c0_89, %c0_90], %89 {strides = array<i32>} : memref<2x1x3x64x64xbf16, #tpu.memory_space<vmem>>, vector<1x1x1x64x64xbf16>,
    %90 = arith.truncf %85 : vector<64x64xf32> to vector<64x64xbf16>
    %c1_91 = arith.constant 1 : index
    %c0_92 = arith.constant 0 : index
    %c0_93 = arith.constant 0 : index
    %c0_94 = arith.constant 0 : index
    %c0_95 = arith.constant 0 : index
    %91 = vector.load %arg6[%c1_91, %c0_92, %c0_93, %c0_94, %c0_95] : memref<2x1x3x64x64xbf16, #tpu.memory_space<vmem>>, vector<1x1x1x64x64xbf16>
    %92 = vector.shape_cast %91 : vector<1x1x1x64x64xbf16> to vector<64x64xbf16>
    %93 = vector.shape_cast %90 : vector<64x64xbf16> to vector<1x1x1x64x64xbf16>
    tpu.vector_store %arg6[%c1_91, %c0_92, %c0_93, %c0_94, %c0_95], %93 {strides = array<i32>} : memref<2x1x3x64x64xbf16, #tpu.memory_space<vmem>>, vector<1x1x1x64x64xbf16>,
    %cst_96 = arith.constant dense<0.000000e+00> : vector<16x64xf32>
    %94 = tpu.matmul %0, %83, %cst_96 {dimension_numbers = #tpu.dot_dimension_numbers<[1], [0], [0], [1], [0, 0, 1, 1], [], []>} : vector<16x64xf32>, vector<64x64xf32>, vector<16x64xf32> -> vector<16x64xf32>
    %cst_97 = arith.constant dense<0.000000e+00> : vector<16x16xf32>
    %95 = tpu.matmul %94, %1, %cst_97 {dimension_numbers = #tpu.dot_dimension_numbers<[1], [0], [0], [1], [0, 0, 1, 1], [], []>} : vector<16x64xf32>, vector<64x16xf32>, vector<16x16xf32> -> vector<16x16xf32>
    %c0_98 = arith.constant 0 : index
    %c0_99 = arith.constant 0 : index
    %c0_100 = arith.constant 0 : index
    %c0_101 = arith.constant 0 : index
    %96 = vector.load %arg7[%c0_98, %c0_99, %c0_100, %c0_101] : memref<1x3x16x16xf32, #tpu.memory_space<vmem>>, vector<1x1x16x16xf32>
    %97 = vector.shape_cast %96 : vector<1x1x16x16xf32> to vector<16x16xf32>
    %98 = vector.shape_cast %95 : vector<16x16xf32> to vector<1x1x16x16xf32>
    tpu.vector_store %arg7[%c0_98, %c0_99, %c0_100, %c0_101], %98 {strides = array<i32>} : memref<1x3x16x16xf32, #tpu.memory_space<vmem>>, vector<1x1x16x16xf32>,
    %cst_102 = arith.constant dense<0.000000e+00> : vector<16x64xf32>
    %99 = tpu.matmul %0, %85, %cst_102 {dimension_numbers = #tpu.dot_dimension_numbers<[1], [0], [0], [1], [0, 0, 1, 1], [], []>} : vector<16x64xf32>, vector<64x64xf32>, vector<16x64xf32> -> vector<16x64xf32>
    %cst_103 = arith.constant dense<0.000000e+00> : vector<16x16xf32>
    %100 = tpu.matmul %99, %1, %cst_103 {dimension_numbers = #tpu.dot_dimension_numbers<[1], [0], [0], [1], [0, 0, 1, 1], [], []>} : vector<16x64xf32>, vector<64x16xf32>, vector<16x16xf32> -> vector<16x16xf32>
    %c0_104 = arith.constant 0 : index
    %c0_105 = arith.constant 0 : index
    %c0_106 = arith.constant 0 : index
    %c0_107 = arith.constant 0 : index
    %101 = vector.load %arg8[%c0_104, %c0_105, %c0_106, %c0_107] : memref<1x3x16x16xf32, #tpu.memory_space<vmem>>, vector<1x1x16x16xf32>
    %102 = vector.shape_cast %101 : vector<1x1x16x16xf32> to vector<16x16xf32>
    %103 = vector.shape_cast %100 : vector<16x16xf32> to vector<1x1x16x16xf32>
    tpu.vector_store %arg8[%c0_104, %c0_105, %c0_106, %c0_107], %103 {strides = array<i32>} : memref<1x3x16x16xf32, #tpu.memory_space<vmem>>, vector<1x1x16x16xf32>,
    return
  }
  func.func @transform_0(%arg0: i32, %arg1: i32) -> (i32, i32, i32, i32) {
    %c0_i32 = arith.constant 0 : i32
    %c0_i32_0 = arith.constant 0 : i32
    %c0_i32_1 = arith.constant 0 : i32
    return %arg0, %c0_i32, %arg1, %c0_i32_0 : i32, i32, i32, i32
  }
  func.func @transform_1(%arg0: i32, %arg1: i32) -> (i32, i32, i32, i32) {
    %c0_i32 = arith.constant 0 : i32
    %c0_i32_0 = arith.constant 0 : i32
    %c0_i32_1 = arith.constant 0 : i32
    return %arg0, %c0_i32, %arg1, %c0_i32_0 : i32, i32, i32, i32
  }
  func.func @transform_2(%arg0: i32, %arg1: i32) -> (i32, i32) {
    %c0_i32 = arith.constant 0 : i32
    %c0_i32_0 = arith.constant 0 : i32
    %c0_i32_1 = arith.constant 0 : i32
    return %c0_i32, %c0_i32_0 : i32, i32
  }
  func.func @transform_3(%arg0: i32, %arg1: i32) -> (i32, i32) {
    %c0_i32 = arith.constant 0 : i32
    %c0_i32_0 = arith.constant 0 : i32
    %c0_i32_1 = arith.constant 0 : i32
    return %c0_i32, %c0_i32_0 : i32, i32
  }
  func.func @transform_4(%arg0: i32, %arg1: i32) -> (i32, i32, i32, i32, i32) {
    %c0_i32 = arith.constant 0 : i32
    %c0_i32_0 = arith.constant 0 : i32
    %c0_i32_1 = arith.constant 0 : i32
    %c0_i32_2 = arith.constant 0 : i32
    return %c0_i32, %arg0, %c0_i32_0, %arg1, %c0_i32_1 : i32, i32, i32, i32, i32
  }
  func.func @transform_5(%arg0: i32, %arg1: i32) -> (i32, i32, i32, i32) {
    %c0_i32 = arith.constant 0 : i32
    %c0_i32_0 = arith.constant 0 : i32
    %c0_i32_1 = arith.constant 0 : i32
    return %arg0, %c0_i32, %arg1, %c0_i32_0 : i32, i32, i32, i32
  }
  func.func @transform_6(%arg0: i32, %arg1: i32) -> (i32, i32, i32, i32) {
    %c0_i32 = arith.constant 0 : i32
    %c0_i32_0 = arith.constant 0 : i32
    %c0_i32_1 = arith.constant 0 : i32
    return %arg0, %c0_i32, %arg1, %c0_i32_0 : i32, i32, i32, i32
  }
}

</mosaic_0001>

<bundles_post_ra>
// kernel: tpu_custom_call.1
= control target key start
LH: loop header
LB: loop body
LE: loop exit
PB: predicated region body
PF: predicated region fallthrough
CT: control target
= control target key end

     0   :  { %s3815_s0 = inlined_call_operand.hbm [shape: f32[2,3,64,64], index: 0, kind: input, shape index: {}]   ;;  %s3816_s1 = inlined_call_operand.hbm [shape: f32[2,3,64,64], index: 1, kind: input, shape index: {}]   ;;  %s3817_s2 = inlined_call_operand.vmem [shape: f32[16,64], index: 2, kind: input, shape index: {}]   ;;  %s3818_s3 = inlined_call_operand.vmem [shape: f32[64,16], index: 3, kind: input, shape index: {}]   ;;  %s3819_s4 = inlined_call_operand.hbm [shape: bf16[2,2,3,64,64], index: 4, kind: output, shape index: {0}]   ;;  %s3820_s5 = inlined_call_operand.hbm [shape: f32[2,3,16,16], index: 5, kind: output, shape index: {1}]   ;;  %s3821_s6 = inlined_call_operand.hbm [shape: f32[2,3,16,16], index: 6, kind: output, shape index: {2}]  }
   0x1   :  { %3827 = sst [smem:[#allocation21_spill]] %s3815_s0 }
   0x2   :  { %12 = vsyncpa [#allocation3], 0 }
   0x3   :  { %14 = vsyncpa [#allocation3 + $0x1], 0 }
   0x4   :  { %15 = vsyncpa [#allocation6], 0 }
   0x5   :  { %17 = vsyncpa [#allocation6 + $0x1], 0 }
   0x6   :  { %18 = vsyncpa [#allocation4], 0 }
   0x7   :  { %20 = vsyncpa [#allocation4 + $0x1], 0 }
   0x8   :  { %21 = vsyncpa [#allocation9], 0 }
   0x9   :  { %23 = vsyncpa [#allocation9 + $0x1], 0  ;;  %s2969_s21 = smov 0   ;;  %s2971_s22 = smov 0  }
   0xa   :  { %s2973_s23 = smov 0   ;;  %s2975_s24 = smov 0  }
   0xb   :  { %s2977_s25 = smov 0   ;;  %s2979_s26 = smov 0  }
   0xc LB: > { %3828 = sst [smem:[#allocation17_spill]] %s2905_s23  ;;  %s3000_s27 = sadd.s32 4294967295, %s2917_s26   ;;  %s2917_s26 = sphi %s2979_s26, %s29_s26   ;;  %s2913_s25 = sphi %s2977_s25, %s3848_s25   ;;  %s2909_s24 = sphi %s2975_s24, %s3847_s24   ;;  %s2905_s23 = sphi %s2973_s23, %s3843_s23   ;;  %s2901_s22 = sphi %s2971_s22, %s3846_s22   ;;  %s2897_s21 = sphi %s2969_s21, %s3845_s21  }
   0xd   : > { %s3822_s28 = sadd.s32 4294967294, %s2917_s26   ;;  %s41_s29 = sadd.s32 1, %s2913_s25 }
   0xe   : > { %s50_s30 = sadd.s32 1, %s2905_s23  ;;  %p43_p0 = scmp.ge.s32.totalorder %s41_s29, 2 }
   0xf   : > { %p57_p1 = scmp.ne.s32.totalorder %s2905_s23, %s2901_s22  ;;  %p58_p2 = scmp.eq.s32.totalorder %s2917_s26, 0 }
  0x10   : > { %p63_p3 = scmp.ne.s32.totalorder %s2901_s22, %s2897_s21  ;;  %s3850_s29 = smov (%p43_p0, %s41_s29), 0 }
  0x11   : > { %3829 = sst [smem:[#allocation18_spill]] %s3850_s29  ;;  %p3012_p4 = por %p58_p2, %p57_p1 }
  0x12   : > { %p64_p5 = scmp.eq.s32.totalorder %s3000_s27, 0  ;;  %s45_s8 = ssub.s32 %s2913_s25, %s3850_s29 }
  0x13   : > { %p159_p6 = scmp.eq.s32.totalorder %s3000_s27, 1  ;;  %p48_p7 = scmp.eq.s32.totalorder %s45_s8, 0 }
  0x14   : > { %p3020_p8 = por %p64_p5, %p63_p3  ;;  %p165_p10 = scmp.eq.s32.totalorder %s3822_s28, 1 }
  0x15   : > { %p3024_p9 = por %p159_p6, %p57_p1  ;;  %p2039_p12 = scmp.ge.s32.totalorder %s2917_s26, 2 }
  0x16   : > { %s3031_s11 = scalar_select %p48_p7, %s2905_s23, %s50_s30  }
  0x17   : > { %p3033_p11 = por %p165_p10, %p63_p3  ;;  %p2686_p13 = scmp.lt.s32.totalorder %s2917_s26, 2 }
  0x18   : > { %3833 = sst [smem:[#allocation19_spill]] %s3031_s11  ;;  %s3040_s13 = sand.u32 1, %s2905_s23  }
  0x19   : > { %s3834_s12 = scalar_select %p3033_p11, 1, 0 }
  0x1a   : > { %s3824_s14 = smul.u32 192, %s3040_s13  ;;  %p3046_p0 = pnand %p2686_p13, %p3012_p4 }
  0x1b   : > { %3835 = sst [smem:[#allocation20_spill]] %s3834_s12  ;;  %s2645_s15 = smul.u32 3072, %s2913_s25 }
  0x1c   : > { %s3837_s0 = sld [smem:[#allocation21_spill]]  ;;  %s251_s20 = scalar_lea.vmem [#allocation2], %s3824_s14 }
  0x1d   : > { %s260_s30 = sshll.u32 %s251_s20, 4  ;;  %p2042_p1 = scmp.ge.s32.totalorder %s2917_s26, 1  ;;  %s261_s30 = int_to_ptr.vmem [resolvable:$true] %s260_s30 }
  0x1e   : > { %s248_s8 = scalar_lea.sflag [#allocation3], %s3040_s13  ;;  %p2749_p2 = pneg %p3046_p0 }
  0x1f   : > { %s2760_s7 = scalar_lea.vmem %s261_s30, 3072  ;;  %s2919_s28 = smov [#allocation2]  }
  0x20   : > { %p2761_p3 = scmp.ne.s32.totalorder %s261_s30, %s2760_s7  ;;  %s2765_s29 = sshll.u32 %s2919_s28, 4  ;;  %s2766_s29 = int_to_ptr.vmem [resolvable:$false] %s2765_s29 }
  0x21   : > { %s2767_s17 = scalar_lea.vmem %s2766_s29, 6144  ;;  %p2768_p6 = scmp.lt.s32.totalorder %s261_s30, %s2766_s29 }
  0x22   : > { %s259_s19 = scalar_lea.hbm %s3837_s0, %s2645_s15  ;;  %p2763_p4 = pnand %p2761_p3, %p2749_p2 }
  0x23   : > { %p2769_p7 = scmp.lt.s32.totalorder %s2767_s17, %s2760_s7 }
  0x24   : > { %p2764_p5 = pneg %p2763_p4 }
  0x25   : > { %p2770_p10 = por %p2769_p7, %p2768_p6 }
  0x27   : > { %p2771_p13 = pnand %p2770_p10, %p2764_p5 }
  0x29   : > { %2774 = shalt.err (!%p2771_p13)
}
  0x2a   : > { %s2920_s18 = smov 128   ;;  %s2921_s20 = smov 8  }
  0x2b   : > { %2672 = dma.hbm_to_vmem [thread:$0]  (!%p3046_p0), %s259_s19, 3072, %s261_s30, %s248_s8, %s2920_s18, %s2920_s18, %s2921_s20  }
  0x2c   : > { %p291_p3 = scmp.lt.s32.totalorder %s2917_s26, 3  ;;  %s282_s29 = scalar_lea.hbm %s3816_s1, %s2645_s15 }
  0x2d   : > { %s3839_s17 = smul.u32 192, %s3040_s13  ;;  %s271_s23 = scalar_lea.sflag [#allocation6], %s3040_s13 }
  0x2e   : > { %p3074_p4 = pnand %p2042_p1, %p291_p3  ;;  %s2922_s19 = smov [#allocation5]  }
  0x2f   : > { %s274_s0 = scalar_lea.vmem [#allocation5], %s3839_s17  ;;  %s2793_s30 = sshll.u32 %s2922_s19, 4  ;;  %s2794_s30 = int_to_ptr.vmem [resolvable:$false] %s2793_s30 }
  0x30   : > { %s283_s11 = sshll.u32 %s274_s0, 4  ;;  %s2795_s14 = scalar_lea.vmem %s2794_s30, 6144  ;;  %s284_s11 = int_to_ptr.vmem [resolvable:$true] %s283_s11 }
  0x31   : > { %s2788_s12 = scalar_lea.vmem %s284_s11, 3072  ;;  %p2796_p10 = scmp.lt.s32.totalorder %s284_s11, %s2794_s30 }
  0x32   : > { %p2789_p5 = scmp.ne.s32.totalorder %s284_s11, %s2788_s12  ;;  %p2797_p1 = scmp.lt.s32.totalorder %s2795_s14, %s2788_s12 }
  0x34   : > { %p2791_p6 = pnand %p2789_p5, %p2749_p2  ;;  %p2798_p13 = por %p2797_p1, %p2796_p10 }
  0x36   : > { %p2792_p7 = pneg %p2791_p6 }
  0x38   : > { %p2799_p3 = pnand %p2798_p13, %p2792_p7 }
  0x3a   : > { %2802 = shalt.err (!%p2799_p3)
}
  0x3b   : > { %2675 = dma.hbm_to_vmem [thread:$0]  (!%p3046_p0), %s282_s29, 3072, %s284_s11, %s271_s23, %s2920_s18, %s2920_s18, %s2921_s20  }
  0x3c   : > { %295 = sbr.rel (%p3074_p4) target bundleno = 620 (0x26c), region = 36  ;;  %s3089_s0 = sand.u32 (!%p3074_p4), 1, %s2901_s22  }
  0x3d   : > { %s3092_s13 = smul.u32 (!%p3074_p4), 192, %s3089_s0  ;;  %s298_s15 = scalar_lea.sflag (!%p3074_p4), [#allocation3], %s3089_s0 }
  0x3f   : > { %s3096_s12 = scalar_lea.vmem (!%p3074_p4), [#allocation2], %s3092_s13 }
  0x41   : > { %2880 = dma.done.wait (%p3020_p8), %s298_s15, 3072  }
  0x42   : > { %2882 = vsyncadd (%p3020_p8), %s298_s15, 4294964224  ;;  %s307_s23 = scalar_lea.sflag [#allocation6], %s3089_s0  ;;  %s3104_s11 = scalar_lea.vmem [#allocation5], %s3092_s13 }
  0x43   : > { %2884 = dma.done.wait (%p3020_p8), %s307_s23, 3072  }
  0x44   : > { %2886 = vsyncadd (%p3020_p8), %s307_s23, 4294964224  ;;  %v376_v0 = vld [vmem:[%s3096_s12 + $0x38] sm:$0xff]  ;;  %v375_v1 = vld [vmem:[%s3096_s12 + $0x30] sm:$0xff]  ;;  %vm466_vm0 = vcmask 519168   ;;  %vm516_vm1 = vcmask 523264   ;;  %s3126_s8 = scalar_lea.vmem [#allocation7], %s3092_s13 }
  0x45   : > { %v374_v2 = vld [vmem:[%s3096_s12 + $0x28] sm:$0xff]  ;;  %v384_v3 = vmul.f32 0.229, %v376_v0  ;;  %v383_v4 = vmul.f32 0.229, %v375_v1  ;;  %v373_v6 = vld [vmem:[%s3096_s12 + $0x20] sm:$0xff] }
  0x46   : > { %v382_v5 = vmul.f32 0.229, %v374_v2  ;;  %v372_v7 = vld [vmem:[%s3096_s12 + $0x18] sm:$0xff]  ;;  %v371_v8 = vld [vmem:[%s3096_s12 + $0x10] sm:$0xff]  ;;  %v381_v12 = vmul.f32 0.229, %v373_v6 }
  0x47   : > { %v392_v9 = vadd.f32 0.485, %v384_v3  ;;  %v391_v10 = vadd.f32 0.485, %v383_v4  ;;  %v380_v13 = vmul.f32 0.229, %v372_v7 }
  0x48   : > { %v390_v11 = vadd.f32 0.485, %v382_v5  ;;  %v379_v14 = vmul.f32 0.229, %v371_v8  ;;  %v389_v18 = vadd.f32 0.485, %v381_v12 }
  0x49   : > { %v2050_v15 = vadd.f32 -0.33, %v392_v9  ;;  %v2049_v16 = vadd.f32 -0.33, %v391_v10  ;;  %v388_v19 = vadd.f32 0.485, %v380_v13 }
  0x4a   : > { %v2048_v17 = vadd.f32 -0.33, %v390_v11  ;;  %v387_v20 = vadd.f32 0.485, %v379_v14  ;;  %v370_v24 = vld [vmem:[%s3096_s12 + $0x8] sm:$0xff]  ;;  %v369_v25 = vld [vmem:[%s3096_s12] sm:$0xff] }
  0x4b   : > { %v2255_v21 = vpack.c.bf16 %v2050_v15, %v2050_v15  ;;  %2416 = vmatprep.subr.mxu0 %v2050_v15  ;;  %v2254_v22 = vpack.c.bf16 %v2049_v16, %v2049_v16  ;;  %v3121_v26 = vld [vmem:[%s3817_s2] sm:$0xff]  ;;  %v2047_v27 = vadd.f32 -0.33, %v389_v18  ;;  %v2046_v28 = vadd.f32 -0.33, %v388_v19  ;;  %v400_v32 = vld [vmem:[%s3104_s11 + $0x38] sm:$0xff] }
  0x4c   : > { %v2253_v23 = vpack.c.bf16 %v2048_v17, %v2048_v17  ;;  %2417 = vmatpush3.msra.mxu0 %v2050_v15  ;;  %v2045_v29 = vadd.f32 -0.33, %v387_v20  ;;  %2432 = vmatprep.mubr.msk.f32.mxu0 %vm516_vm1, %v3121_v26  ;;  %v378_v30 = vmul.f32 0.229, %v370_v24  ;;  %v377_v31 = vmul.f32 0.229, %v369_v25 }
  0x4d   : > { %2074 = vst.msk [vmem:[%s3126_s8 + $0x5c] sm:$0xf] %vm466_vm0, %v2255_v21  ;;  %2073 = vst.msk [vmem:[%s3126_s8 + $0x58] sm:$0xf] %vm466_vm0, %v2254_v22  ;;  %2418 = vmatprep.subr.mxu0 %v2049_v16  ;;  %v2252_v33 = vpack.c.bf16 %v2047_v27, %v2047_v27  ;;  %v2251_v34 = vpack.c.bf16 %v2046_v28, %v2046_v28  ;;  %v408_v36 = vmul.f32 0.229, %v400_v32 }
  0x4e   : > { %2072 = vst.msk [vmem:[%s3126_s8 + $0x54] sm:$0xf] %vm466_vm0, %v2253_v23  ;;  %2419 = vmatpush3.msra.mxu0 %v2049_v16  ;;  %v2250_v35 = vpack.c.bf16 %v2045_v29, %v2045_v29  ;;  %v399_v37 = vld [vmem:[%s3104_s11 + $0x30] sm:$0xff]  ;;  %v398_v38 = vld [vmem:[%s3104_s11 + $0x28] sm:$0xff]  ;;  %v397_v39 = vld [vmem:[%s3104_s11 + $0x20] sm:$0xff]  ;;  %s1776_s28 = sand.u32 1, %s3000_s27  }
  0x4f   : > { %2420 = vmatprep.subr.mxu0 %v2048_v17  ;;  %v386_v40 = vadd.f32 0.485, %v378_v30  ;;  %v385_v41 = vadd.f32 0.485, %v377_v31  ;;  %v407_v42 = vmul.f32 0.229, %v399_v37 }
  0x50   : > { %2421 = vmatpush3.msra.mxu0 %v2048_v17  ;;  %2071 = vst.msk [vmem:[%s3126_s8 + $0x50] sm:$0xf] %vm466_vm0, %v2252_v33  ;;  %2070 = vst.msk [vmem:[%s3126_s8 + $0x4c] sm:$0xf] %vm466_vm0, %v2251_v34  ;;  %v416_v43 = vadd.f32 0.485, %v408_v36 }
  0x51   : > { %2069 = vst.msk [vmem:[%s3126_s8 + $0x48] sm:$0xf] %vm466_vm0, %v2250_v35  ;;  %v406_v44 = vmul.f32 0.229, %v398_v38  ;;  %v405_v45 = vmul.f32 0.229, %v397_v39  ;;  %2422 = vmatprep.subr.mxu0 %v2047_v27 }
  0x52   : > { %v2044_v46 = vadd.f32 -0.33, %v386_v40  ;;  %v2043_v47 = vadd.f32 -0.33, %v385_v41  ;;  %v415_v48 = vadd.f32 0.485, %v407_v42  ;;  %2423 = vmatpush3.msra.mxu0 %v2047_v27 }
  0x53   : > { %v2058_v49 = vadd.f32 -0.33, %v416_v43  ;;  %v414_v50 = vadd.f32 0.485, %v406_v44  ;;  %v413_v51 = vadd.f32 0.485, %v405_v45  ;;  %2424 = vmatprep.subr.mxu0 %v2046_v28 }
  0x54   : > { %v2249_v52 = vpack.c.bf16 %v2044_v46, %v2044_v46  ;;  %v2248_v53 = vpack.c.bf16 %v2043_v47, %v2043_v47  ;;  %v3144_v54 = vadd.f32 -0.33, %v415_v48  ;;  %v396_v55 = vld [vmem:[%s3104_s11 + $0x18] sm:$0xff]  ;;  %v395_v56 = vld [vmem:[%s3104_s11 + $0x10] sm:$0xff]  ;;  %v394_v57 = vld [vmem:[%s3104_s11 + $0x8] sm:$0xff]  ;;  %2425 = vmatpush3.msra.mxu0 %v2046_v28  ;;  %s2649_s29 = smul.u32 48, %s3089_s0 }
  0x55   : > { %v2263_v58 = vpack.c.bf16 %v2058_v49, %v2058_v49  ;;  %v3149_v59 = vadd.f32 -0.33, %v414_v50  ;;  %v3151_v60 = vadd.f32 -0.33, %v413_v51  ;;  %v404_v61 = vmul.f32 0.229, %v396_v55  ;;  %2426 = vmatprep.subr.mxu0 %v2045_v29 }
  0x56   : > { %2068 = vst.msk [vmem:[%s3126_s8 + $0x44] sm:$0xf] %vm466_vm0, %v2249_v52  ;;  %2067 = vst.msk [vmem:[%s3126_s8 + $0x40] sm:$0xf] %vm466_vm0, %v2248_v53  ;;  %v2262_v62 = vpack.c.bf16 %v3144_v54, %v3144_v54  ;;  %v403_v63 = vmul.f32 0.229, %v395_v56  ;;  %2427 = vmatpush3.msra.mxu0 %v2045_v29 }
  0x57   : > { %v402_v0 = vmul.f32 0.229, %v394_v57  ;;  %v393_v1 = vld [vmem:[%s3104_s11] sm:$0xff]  ;;  %v2110_v2 = vld [vmem:[%s3096_s12 + $0x78] sm:$0xff]  ;;  %v3164_v3 = vld [vmem:[%s3817_s2 + $0x8] sm:$0xff]  ;;  %v2261_v4 = vpack.c.bf16 %v3149_v59, %v3149_v59  ;;  %v2260_v5 = vpack.c.bf16 %v3151_v60, %v3151_v60  ;;  %2428 = vmatprep.subr.mxu0 %v2044_v46  ;;  %vm680_vm2 = vcmask 130048  }
  0x58   : > { %2090 = vst.msk [vmem:[%s3126_s8 + $0xbc] sm:$0xf] %vm466_vm0, %v2263_v58  ;;  %v412_v6 = vadd.f32 0.485, %v404_v61  ;;  %v401_v7 = vmul.f32 0.229, %v393_v1  ;;  %2429 = vmatpush3.msra.mxu0 %v2044_v46 }
  0x59   : > { %v2109_v8 = vld [vmem:[%s3096_s12 + $0x70] sm:$0xff]  ;;  %v2108_v9 = vld [vmem:[%s3096_s12 + $0x68] sm:$0xff]  ;;  %2089 = vst.msk [vmem:[%s3126_s8 + $0xb8] sm:$0xf] %vm466_vm0, %v2262_v62  ;;  %v411_v10 = vadd.f32 0.485, %v403_v63  ;;  %2430 = vmatprep.subr.mxu0 %v2043_v47 }
  0x5a   : > { %v410_v11 = vadd.f32 0.485, %v402_v0  ;;  %v858_v12 = vmul.f32 0.224, %v2110_v2  ;;  %2088 = vst.msk [vmem:[%s3126_s8 + $0xb4] sm:$0xf] %vm466_vm0, %v2261_v4  ;;  %2431 = vmatpush3.msra.mxu0 %v2043_v47 }
  0x5b   : > { %2087 = vst.msk [vmem:[%s3126_s8 + $0xb0] sm:$0xf] %vm466_vm0, %v2260_v5  ;;  %v3180_v13 = vadd.f32 -0.33, %v412_v6  ;;  %v409_v14 = vadd.f32 0.485, %v401_v7  ;;  %2433 = vmatmul.mubr.msk.f32.vlgmr.msra.gmra.mxu0 %vm516_vm1, %v3164_v3  ;;  %2454 = vmatprep.subr.mxu0 %v2058_v49 }
  0x5c   : > { %v857_v15 = vmul.f32 0.224, %v2109_v8  ;;  %v3182_v16 = vadd.f32 -0.33, %v411_v10  ;;  %v3184_v17 = vadd.f32 -0.33, %v410_v11  ;;  %2455 = vmatpush3.msra.mxu0 %v2058_v49  ;;  %2470 = vmatprep.mubr.msk.f32.mxu0 %vm516_vm1, %v3121_v26 }
  0x5d   : > { %v866_v18 = vadd.f32 0.456, %v858_v12  ;;  %v2259_v19 = vpack.c.bf16 %v3180_v13, %v3180_v13  ;;  %v3188_v20 = vadd.f32 -0.33, %v409_v14  ;;  %v856_v22 = vmul.f32 0.224, %v2108_v9  ;;  %2456 = vmatprep.subr.mxu0 %v3144_v54 }
  0x5e   : > { %v865_v21 = vadd.f32 0.456, %v857_v15  ;;  %v2258_v23 = vpack.c.bf16 %v3182_v16, %v3182_v16  ;;  %v2257_v24 = vpack.c.bf16 %v3184_v17, %v3184_v17  ;;  %v2107_v27 = vld [vmem:[%s3096_s12 + $0x60] sm:$0xff]  ;;  %v2106_v28 = vld [vmem:[%s3096_s12 + $0x58] sm:$0xff]  ;;  %v2105_v29 = vld [vmem:[%s3096_s12 + $0x50] sm:$0xff]  ;;  %2457 = vmatpush3.msra.mxu0 %v3144_v54  ;;  %s3675_s7 = scalar_lea.vmem [#allocation8], %s2649_s29 }
  0x5f   : > { %v3196_v25 = vadd.f32 -0.33, %v866_v18  ;;  %2086 = vst.msk [vmem:[%s3126_s8 + $0xac] sm:$0xf] %vm466_vm0, %v2259_v19  ;;  %v2256_v30 = vpack.c.bf16 %v3188_v20, %v3188_v20  ;;  %v864_v32 = vadd.f32 0.456, %v856_v22  ;;  %2458 = vmatprep.subr.mxu0 %v3149_v59 }
  0x60   : > { %v3207_v31 = vadd.f32 -0.33, %v865_v21  ;;  %v855_v33 = vmul.f32 0.224, %v2107_v27  ;;  %2085 = vst.msk [vmem:[%s3126_s8 + $0xa8] sm:$0xf] %vm466_vm0, %v2258_v23  ;;  %2459 = vmatpush3.msra.mxu0 %v3149_v59 }
  0x61   : > { %2084 = vst.msk [vmem:[%s3126_s8 + $0xa4] sm:$0xf] %vm466_vm0, %v2257_v24  ;;  %v2271_v34 = vpack.c.bf16 %v3196_v25, %v3196_v25  ;;  %v854_v35 = vmul.f32 0.224, %v2106_v28  ;;  %v853_v36 = vmul.f32 0.224, %v2105_v29  ;;  %2460 = vmatprep.subr.mxu0 %v3151_v60 }
  0x62   : > { %v2104_v37 = vld [vmem:[%s3096_s12 + $0x48] sm:$0xff]  ;;  %v2103_v38 = vld [vmem:[%s3096_s12 + $0x40] sm:$0xff]  ;;  %2083 = vst.msk [vmem:[%s3126_s8 + $0xa0] sm:$0xf] %vm466_vm0, %v2256_v30  ;;  %v2270_v39 = vpack.c.bf16 %v3207_v31, %v3207_v31  ;;  %v3223_v40 = vadd.f32 -0.33, %v864_v32  ;;  %2461 = vmatpush3.msra.mxu0 %v3151_v60 }
  0x63   : > { %v863_v41 = vadd.f32 0.456, %v855_v33  ;;  %v852_v42 = vmul.f32 0.224, %v2104_v37  ;;  %2150 = vst.msk [vmem:[%s3126_s8 + $0x3c] sm:$0xf] %vm466_vm0, %v2271_v34  ;;  %2462 = vmatprep.subr.mxu0 %v3180_v13 }
  0x64   : > { %v862_v43 = vadd.f32 0.456, %v854_v35  ;;  %v861_v44 = vadd.f32 0.456, %v853_v36  ;;  %v851_v45 = vmul.f32 0.224, %v2103_v38  ;;  %v2269_v46 = vpack.c.bf16 %v3223_v40, %v3223_v40  ;;  %2463 = vmatpush3.msra.mxu0 %v3180_v13 }
  0x65   : > { %2149 = vst.msk [vmem:[%s3126_s8 + $0x38] sm:$0xf] %vm466_vm0, %v2270_v39  ;;  %v3233_v47 = vadd.f32 -0.33, %v863_v41  ;;  %v860_v48 = vadd.f32 0.456, %v852_v42  ;;  %2464 = vmatprep.subr.mxu0 %v3182_v16 }
  0x66   : > { %v2118_v49 = vld [vmem:[%s3104_s11 + $0x78] sm:$0xff]  ;;  %v2117_v50 = vld [vmem:[%s3104_s11 + $0x70] sm:$0xff]  ;;  %v3238_v51 = vadd.f32 -0.33, %v862_v43  ;;  %v3240_v52 = vadd.f32 -0.33, %v861_v44  ;;  %2465 = vmatpush3.msra.mxu0 %v3182_v16 }
  0x67   : > { %v859_v53 = vadd.f32 0.456, %v851_v45  ;;  %2148 = vst.msk [vmem:[%s3126_s8 + $0x34] sm:$0xf] %vm466_vm0, %v2269_v46  ;;  %v2268_v54 = vpack.c.bf16 %v3233_v47, %v3233_v47  ;;  %v3247_v55 = vadd.f32 -0.33, %v860_v48  ;;  %2466 = vmatprep.subr.mxu0 %v3184_v17 }
  0x68   : > { %v883_v56 = vmul.f32 0.224, %v2118_v49  ;;  %v882_v57 = vmul.f32 0.224, %v2117_v50  ;;  %v2267_v58 = vpack.c.bf16 %v3238_v51, %v3238_v51  ;;  %v2266_v59 = vpack.c.bf16 %v3240_v52, %v3240_v52  ;;  %v2116_v61 = vld [vmem:[%s3104_s11 + $0x68] sm:$0xff]  ;;  %v2115_v62 = vld [vmem:[%s3104_s11 + $0x60] sm:$0xff]  ;;  %2467 = vmatpush3.msra.mxu0 %v3184_v17 }
  0x69   : > { %v3254_v60 = vadd.f32 -0.33, %v859_v53  ;;  %v2114_v63 = vld [vmem:[%s3104_s11 + $0x58] sm:$0xff]  ;;  %2147 = vst.msk [vmem:[%s3126_s8 + $0x30] sm:$0xf] %vm466_vm0, %v2268_v54  ;;  %v2265_v0 = vpack.c.bf16 %v3247_v55, %v3247_v55  ;;  %v2113_v8 = vld [vmem:[%s3104_s11 + $0x50] sm:$0xff]  ;;  %2468 = vmatprep.subr.mxu0 %v3188_v20 }
  0x6a   : > { %v891_v1 = vadd.f32 0.456, %v883_v56  ;;  %v890_v2 = vadd.f32 0.456, %v882_v57  ;;  %v881_v4 = vmul.f32 0.224, %v2116_v61  ;;  %2469 = vmatpush3.msra.mxu0 %v3188_v20 }
  0x6b   : > { %2146 = vst.msk [vmem:[%s3126_s8 + $0x2c] sm:$0xf] %vm466_vm0, %v2267_v58  ;;  %2145 = vst.msk [vmem:[%s3126_s8 + $0x28] sm:$0xf] %vm466_vm0, %v2266_v59  ;;  %v2264_v5 = vpack.c.bf16 %v3254_v60, %v3254_v60  ;;  %v880_v6 = vmul.f32 0.224, %v2115_v62  ;;  %2471 = vmatmul.mubr.msk.f32.vlgmr.msra.gmra.mxu0 %vm516_vm1, %v3164_v3  ;;  %2492 = vmatprep.subr.mxu0 %v3196_v25 }
  0x6c   : > { %v879_v7 = vmul.f32 0.224, %v2114_v63  ;;  %v2112_v9 = vld [vmem:[%s3104_s11 + $0x48] sm:$0xff]  ;;  %2144 = vst.msk [vmem:[%s3126_s8 + $0x24] sm:$0xf] %vm466_vm0, %v2265_v0  ;;  %v2111_v22 = vld [vmem:[%s3104_s11 + $0x40] sm:$0xff]  ;;  %2493 = vmatpush3.msra.mxu0 %v3196_v25  ;;  %2508 = vmatprep.mubr.msk.f32.mxu0 %vm516_vm1, %v3121_v26 }
  0x6d   : > { %v3276_v10 = vadd.f32 -0.33, %v891_v1  ;;  %v3278_v11 = vadd.f32 -0.33, %v890_v2  ;;  %v889_v12 = vadd.f32 0.456, %v881_v4  ;;  %2494 = vmatprep.subr.mxu0 %v3207_v31 }
  0x6e   : > { %2143 = vst.msk [vmem:[%s3126_s8 + $0x20] sm:$0xf] %vm466_vm0, %v2264_v5  ;;  %v888_v13 = vadd.f32 0.456, %v880_v6  ;;  %v887_v14 = vadd.f32 0.456, %v879_v7  ;;  %2495 = vmatpush3.msra.mxu0 %v3207_v31 }
  0x6f   : > { %v878_v15 = vmul.f32 0.224, %v2113_v8  ;;  %v2279_v16 = vpack.c.bf16 %v3276_v10, %v3276_v10  ;;  %v2278_v18 = vpack.c.bf16 %v3278_v11, %v3278_v11  ;;  %v3288_v19 = vadd.f32 -0.33, %v889_v12  ;;  %v2186_v23 = vld [vmem:[%s3096_s12 + $0xb8] sm:$0xff]  ;;  %v2185_v35 = vld [vmem:[%s3096_s12 + $0xb0] sm:$0xff]  ;;  %2496 = vmatprep.subr.mxu0 %v3223_v40 }
  0x70   : > { %v877_v21 = vmul.f32 0.224, %v2112_v9  ;;  %v3293_v24 = vadd.f32 -0.33, %v888_v13  ;;  %v3295_v27 = vadd.f32 -0.33, %v887_v14  ;;  %2497 = vmatpush3.msra.mxu0 %v3223_v40 }
  0x71   : > { %v886_v17 = vadd.f32 0.456, %v878_v15  ;;  %2166 = vst.msk [vmem:[%s3126_s8 + $0x9c] sm:$0xf] %vm466_vm0, %v2279_v16  ;;  %2165 = vst.msk [vmem:[%s3126_s8 + $0x98] sm:$0xf] %vm466_vm0, %v2278_v18  ;;  %v2277_v28 = vpack.c.bf16 %v3288_v19, %v3288_v19  ;;  %2498 = vmatprep.subr.mxu0 %v3233_v47 }
  0x72   : > { %v885_v29 = vadd.f32 0.456, %v877_v21  ;;  %v876_v30 = vmul.f32 0.224, %v2111_v22  ;;  %v1324_v32 = vmul.f32 0.225, %v2186_v23  ;;  %v2276_v20 = vpack.c.bf16 %v3293_v24, %v3293_v24  ;;  %2499 = vmatpush3.msra.mxu0 %v3233_v47 }
  0x73   : > { %v2275_v33 = vpack.c.bf16 %v3295_v27, %v3295_v27  ;;  %v3311_v34 = vadd.f32 -0.33, %v886_v17  ;;  %v2184_v36 = vld [vmem:[%s3096_s12 + $0xa8] sm:$0xff]  ;;  %v2183_v37 = vld [vmem:[%s3096_s12 + $0xa0] sm:$0xff]  ;;  %2164 = vst.msk [vmem:[%s3126_s8 + $0x94] sm:$0xf] %vm466_vm0, %v2277_v28  ;;  %2500 = vmatprep.subr.mxu0 %v3238_v51 }
  0x74   : > { %v3321_v38 = vadd.f32 -0.33, %v885_v29  ;;  %v884_v39 = vadd.f32 0.456, %v876_v30  ;;  %v1332_v41 = vadd.f32 0.406, %v1324_v32  ;;  %2501 = vmatpush3.msra.mxu0 %v3238_v51 }
  0x75   : > { %2163 = vst.msk [vmem:[%s3126_s8 + $0x90] sm:$0xf] %vm466_vm0, %v2276_v20  ;;  %2162 = vst.msk [vmem:[%s3126_s8 + $0x8c] sm:$0xf] %vm466_vm0, %v2275_v33  ;;  %v2274_v25 = vpack.c.bf16 %v3311_v34, %v3311_v34  ;;  %v1323_v42 = vmul.f32 0.225, %v2185_v35  ;;  %2502 = vmatprep.subr.mxu0 %v3240_v52 }
  0x76   : > { %v1322_v43 = vmul.f32 0.225, %v2184_v36  ;;  %v1321_v44 = vmul.f32 0.225, %v2183_v37  ;;  %v2273_v45 = vpack.c.bf16 %v3321_v38, %v3321_v38  ;;  %v3333_v46 = vadd.f32 -0.33, %v884_v39  ;;  %2503 = vmatpush3.msra.mxu0 %v3240_v52 }
  0x77   : > { %v3335_v48 = vadd.f32 -0.33, %v1332_v41  ;;  %v2182_v49 = vld [vmem:[%s3096_s12 + $0x98] sm:$0xff]  ;;  %v2181_v50 = vld [vmem:[%s3096_s12 + $0x90] sm:$0xff]  ;;  %2161 = vst.msk [vmem:[%s3126_s8 + $0x88] sm:$0xf] %vm466_vm0, %v2274_v25  ;;  %2504 = vmatprep.subr.mxu0 %v3247_v55 }
  0x78   : > { %v1331_v53 = vadd.f32 0.406, %v1323_v42  ;;  %v1330_v54 = vadd.f32 0.406, %v1322_v43  ;;  %v1329_v31 = vadd.f32 0.406, %v1321_v44  ;;  %v2272_v56 = vpack.c.bf16 %v3333_v46, %v3333_v46  ;;  %2505 = vmatpush3.msra.mxu0 %v3247_v55 }
  0x79   : > { %2160 = vst.msk [vmem:[%s3126_s8 + $0x84] sm:$0xf] %vm466_vm0, %v2273_v45  ;;  %v2287_v57 = vpack.c.bf16 %v3335_v48, %v3335_v48  ;;  %v1320_v58 = vmul.f32 0.225, %v2182_v49  ;;  %v1319_v59 = vmul.f32 0.225, %v2181_v50  ;;  %2506 = vmatprep.subr.mxu0 %v3254_v60 }
  0x7a   : > { %v2180_v61 = vld [vmem:[%s3096_s12 + $0x88] sm:$0xff]  ;;  %v2179_v62 = vld [vmem:[%s3096_s12 + $0x80] sm:$0xff]  ;;  %v3352_v63 = vadd.f32 -0.33, %v1331_v53  ;;  %v3354_v40 = vadd.f32 -0.33, %v1330_v54  ;;  %2507 = vmatpush3.msra.mxu0 %v3254_v60 }
  0x7b   : > { %v3356_v0 = vadd.f32 -0.33, %v1329_v31  ;;  %2159 = vst.msk [vmem:[%s3126_s8 + $0x80] sm:$0xf] %vm466_vm0, %v2272_v56  ;;  %1413 = vst.msk [vmem:[%s3126_s8 + $0x1c] sm:$0xf] %vm466_vm0, %v2287_v57  ;;  %2509 = vmatmul.mubr.msk.f32.vlgmr.msra.gmra.mxu0 %vm516_vm1, %v3164_v3  ;;  %2530 = vmatprep.subr.mxu0 %v3276_v10 }
  0x7c   : > { %v1328_v1 = vadd.f32 0.406, %v1320_v58  ;;  %v1327_v2 = vadd.f32 0.406, %v1319_v59  ;;  %v1318_v4 = vmul.f32 0.225, %v2180_v61  ;;  %v2286_v5 = vpack.c.bf16 %v3352_v63, %v3352_v63  ;;  %2531 = vmatpush3.msra.mxu0 %v3276_v10  ;;  %2546 = vmatprep.mubr.msk.f32.mxu0 %vm516_vm1, %v3121_v26 }
  0x7d   : > { %v2285_v6 = vpack.c.bf16 %v3354_v40, %v3354_v40  ;;  %v2284_v47 = vpack.c.bf16 %v3356_v0, %v3356_v0  ;;  %v1317_v7 = vmul.f32 0.225, %v2179_v62  ;;  %v2194_v8 = vld [vmem:[%s3104_s11 + $0xb8] sm:$0xff]  ;;  %v2193_v9 = vld [vmem:[%s3104_s11 + $0xb0] sm:$0xff]  ;;  %v2192_v12 = vld [vmem:[%s3104_s11 + $0xa8] sm:$0xff]  ;;  %2532 = vmatprep.subr.mxu0 %v3278_v11  ;;  %s3681_s17 = scalar_lea.vmem [#allocation10], %s2649_s29 }
  0x7e   : > { %v3374_v13 = vadd.f32 -0.33, %v1328_v1  ;;  %v3376_v14 = vadd.f32 -0.33, %v1327_v2  ;;  %v1326_v15 = vadd.f32 0.406, %v1318_v4  ;;  %2533 = vmatpush3.msra.mxu0 %v3278_v11 }
  0x7f   : > { %1412 = vst.msk [vmem:[%s3126_s8 + $0x18] sm:$0xf] %vm466_vm0, %v2286_v5  ;;  %1411 = vst.msk [vmem:[%s3126_s8 + $0x14] sm:$0xf] %vm466_vm0, %v2285_v6  ;;  %v1325_v16 = vadd.f32 0.406, %v1317_v7  ;;  %2534 = vmatprep.subr.mxu0 %v3288_v19 }
  0x80   : > { %1410 = vst.msk [vmem:[%s3126_s8 + $0x10] sm:$0xf] %vm466_vm0, %v2284_v47  ;;  %v1349_v18 = vmul.f32 0.225, %v2194_v8  ;;  %v1348_v51 = vmul.f32 0.225, %v2193_v9  ;;  %v2283_v21 = vpack.c.bf16 %v3374_v13, %v3374_v13  ;;  %v2282_v22 = vpack.c.bf16 %v3376_v14, %v3376_v14  ;;  %2535 = vmatpush3.msra.mxu0 %v3288_v19 }
  0x81   : > { %v3390_v23 = vadd.f32 -0.33, %v1326_v15  ;;  %v1347_v17 = vmul.f32 0.225, %v2192_v12  ;;  %v2191_v28 = vld [vmem:[%s3104_s11 + $0xa0] sm:$0xff]  ;;  %v2190_v29 = vld [vmem:[%s3104_s11 + $0x98] sm:$0xff]  ;;  %2536 = vmatprep.subr.mxu0 %v3293_v24 }
  0x82   : > { %v3395_v30 = vadd.f32 -0.33, %v1325_v16  ;;  %v1357_v32 = vadd.f32 0.406, %v1349_v18  ;;  %v1356_v52 = vadd.f32 0.406, %v1348_v51  ;;  %2537 = vmatpush3.msra.mxu0 %v3293_v24 }
  0x83   : > { %1409 = vst.msk [vmem:[%s3126_s8 + $0xc] sm:$0xf] %vm466_vm0, %v2283_v21  ;;  %1408 = vst.msk [vmem:[%s3126_s8 + $0x8] sm:$0xf] %vm466_vm0, %v2282_v22  ;;  %v2281_v20 = vpack.c.bf16 %v3390_v23, %v3390_v23  ;;  %v1355_v33 = vadd.f32 0.406, %v1347_v17  ;;  %2538 = vmatprep.subr.mxu0 %v3295_v27 }
  0x84   : > { %v1346_v35 = vmul.f32 0.225, %v2191_v28  ;;  %v1345_v36 = vmul.f32 0.225, %v2190_v29  ;;  %v2280_v37 = vpack.c.bf16 %v3395_v30, %v3395_v30  ;;  %v3407_v39 = vadd.f32 -0.33, %v1357_v32  ;;  %2539 = vmatpush3.msra.mxu0 %v3295_v27 }
  0x85   : > { %v3409_v55 = vadd.f32 -0.33, %v1356_v52  ;;  %v2189_v41 = vld [vmem:[%s3104_s11 + $0x90] sm:$0xff]  ;;  %v2188_v25 = vld [vmem:[%s3104_s11 + $0x88] sm:$0xff]  ;;  %1407 = vst.msk [vmem:[%s3126_s8 + $0x4] sm:$0xf] %vm466_vm0, %v2281_v20  ;;  %2540 = vmatprep.subr.mxu0 %v3311_v34 }
  0x86   : > { %v3416_v42 = vadd.f32 -0.33, %v1355_v33  ;;  %v1354_v43 = vadd.f32 0.406, %v1346_v35  ;;  %v1353_v44 = vadd.f32 0.406, %v1345_v36  ;;  %v2295_v45 = vpack.c.bf16 %v3407_v39, %v3407_v39  ;;  %2541 = vmatpush3.msra.mxu0 %v3311_v34 }
  0x87   : > { %1406 = vst.msk [vmem:[%s3126_s8] sm:$0xf] %vm466_vm0, %v2280_v37  ;;  %v2294_v60 = vpack.c.bf16 %v3409_v55, %v3409_v55  ;;  %v1344_v49 = vmul.f32 0.225, %v2189_v41  ;;  %v1343_v50 = vmul.f32 0.225, %v2188_v25  ;;  %2542 = vmatprep.subr.mxu0 %v3321_v38 }
  0x88   : > { %v2187_v53 = vld [vmem:[%s3104_s11 + $0x80] sm:$0xff]  ;;  %v3431_v54 = vld [vmem:[%s3818_s3 + $0x38] sm:$0xff]  ;;  %v2293_v31 = vpack.c.bf16 %v3416_v42, %v3416_v42  ;;  %v3438_v56 = vadd.f32 -0.33, %v1354_v43  ;;  %v3440_v57 = vadd.f32 -0.33, %v1353_v44  ;;  %2543 = vmatpush3.msra.mxu0 %v3321_v38 }
  0x89   : > { %v1342_v58 = vmul.f32 0.225, %v2187_v53  ;;  %2234 = vst.msk [vmem:[%s3126_s8 + $0x7c] sm:$0xf] %vm466_vm0, %v2295_v45  ;;  %2233 = vst.msk [vmem:[%s3126_s8 + $0x78] sm:$0xf] %vm466_vm0, %v2294_v60  ;;  %2435 = vmatprep.subr.mxu1 %v3431_v54  ;;  %2544 = vmatprep.subr.mxu0 %v3333_v46 }
  0x8a   : > { %v1352_v59 = vadd.f32 0.406, %v1344_v49  ;;  %v1351_v10 = vadd.f32 0.406, %v1343_v50  ;;  %v3451_v61 = vld [vmem:[%s3818_s3 + $0x30] sm:$0xff]  ;;  %v2292_v62 = vpack.c.bf16 %v3438_v56, %v3438_v56  ;;  %v2291_v1 = vpack.c.bf16 %v3440_v57, %v3440_v57  ;;  %2436 = vmatpush3.msra.mxu1 %v3431_v54  ;;  %v3464_v4 = vld [vmem:[%s3818_s3 + $0x28] sm:$0xff]  ;;  %2545 = vmatpush3.msra.mxu0 %v3333_v46 }
  0x8b   : > { %2232 = vst.msk [vmem:[%s3126_s8 + $0x74] sm:$0xf] %vm466_vm0, %v2293_v31  ;;  %v1350_v2 = vadd.f32 0.406, %v1342_v58  ;;  %2437 = vmatprep.subr.mxu1 %v3451_v61  ;;  %v3483_v47 = vld [vmem:[%s3818_s3 + $0x20] sm:$0xff]  ;;  %v3498_v9 = vld [vmem:[%s3818_s3 + $0x18] sm:$0xff]  ;;  %2547 = vmatmul.mubr.msk.f32.vlgmr.msra.gmra.mxu0 %vm516_vm1, %v3164_v3 }
  0x8c   : > { %v3467_v5 = vadd.f32 -0.33, %v1352_v59  ;;  %v3469_v11 = vadd.f32 -0.33, %v1351_v10  ;;  %2231 = vst.msk [vmem:[%s3126_s8 + $0x70] sm:$0xf] %vm466_vm0, %v2292_v62  ;;  %2438 = vmatpush3.msra.mxu1 %v3451_v61  ;;  %2568 = vmatprep.subr.mxu0 %v3335_v48 }
  0x8d   : > { %2230 = vst.msk [vmem:[%s3126_s8 + $0x6c] sm:$0xf] %vm466_vm0, %v2291_v1  ;;  %v3477_v6 = vadd.f32 -0.33, %v1350_v2  ;;  %2439 = vmatprep.subr.mxu1 %v3464_v4  ;;  %v3513_v24 = vld [vmem:[%s3818_s3 + $0x10] sm:$0xff]  ;;  %2569 = vmatpush3.msra.mxu0 %v3335_v48  ;;  %v3548_v27 = vld [vmem:[%s3818_s3 + $0x8] sm:$0xff] }
  0x8e   : > { %v2290_v19 = vpack.c.bf16 %v3467_v5, %v3467_v5  ;;  %v2289_v7 = vpack.c.bf16 %v3469_v11, %v3469_v11  ;;  %2440 = vmatpush3.msra.mxu1 %v3464_v4  ;;  %2584 = vmatprep.mubr.msk.f32.mxu0 %vm516_vm1, %v3121_v26  ;;  %v3559_v34 = vld [vmem:[%s3818_s3] sm:$0xff]  ;;  %s1772_s19 = scalar_lea.sflag [#allocation4], %s3089_s0  ;;  %s3706_s30 = scalar_lea.sflag [#allocation9], %s1776_s28 }
  0x8f   : > { %v2288_v8 = vpack.c.bf16 %v3477_v6, %v3477_v6  ;;  %2441 = vmatprep.subr.mxu1 %v3483_v47  ;;  %2570 = vmatprep.subr.mxu0 %v3352_v63 }
  0x90   : > { %2229 = vst.msk [vmem:[%s3126_s8 + $0x68] sm:$0xf] %vm466_vm0, %v2290_v19  ;;  %2228 = vst.msk [vmem:[%s3126_s8 + $0x64] sm:$0xf] %vm466_vm0, %v2289_v7  ;;  %2442 = vmatpush3.msra.mxu1 %v3483_v47  ;;  %2571 = vmatpush3.msra.mxu0 %v3352_v63 }
  0x91   : > { %2227 = vst.msk [vmem:[%s3126_s8 + $0x60] sm:$0xf] %vm466_vm0, %v2288_v8  ;;  %2443 = vmatprep.subr.mxu1 %v3498_v9  ;;  %2572 = vmatprep.subr.mxu0 %v3354_v40 }
  0x92   : > { %2444 = vmatpush3.msra.mxu1 %v3498_v9  ;;  %2573 = vmatpush3.msra.mxu0 %v3354_v40 }
  0x93   : > { %2445 = vmatprep.subr.mxu1 %v3513_v24  ;;  %2574 = vmatprep.subr.mxu0 %v3356_v0 }
  0x94   : > { %2446 = vmatpush3.msra.mxu1 %v3513_v24  ;;  %2575 = vmatpush3.msra.mxu0 %v3356_v0 }
  0x95   : > { %2576 = vmatprep.subr.mxu0 %v3374_v13  ;;  %2447 = vmatprep.subr.mxu1 %v3548_v27 }
  0x96   : > { %2577 = vmatpush3.msra.mxu0 %v3374_v13  ;;  %2448 = vmatpush3.msra.mxu1 %v3548_v27 }
  0x97   : > { %2578 = vmatprep.subr.mxu0 %v3376_v14  ;;  %2449 = vmatprep.subr.mxu1 %v3559_v34 }
  0x98   : > { %2579 = vmatpush3.msra.mxu0 %v3376_v14  ;;  %2450 = vmatpush3.msra.mxu1 %v3559_v34 }
  0x99   : > { %2580 = vmatprep.subr.mxu0 %v3390_v23  ;;  %2473 = vmatprep.subr.mxu1 %v3431_v54 }
  0x9a   : > { %2581 = vmatpush3.msra.mxu0 %v3390_v23 }
  0x9b   : > { %2582 = vmatprep.subr.mxu0 %v3395_v30 }
  0x9c   : > { %2583 = vmatpush3.msra.mxu0 %v3395_v30 }
  0x9d   : > { %2585 = vmatmul.mubr.msk.f32.vlgmr.msra.gmra.mxu0 %vm516_vm1, %v3164_v3  ;;  %2606 = vmatprep.subr.mxu0 %v3407_v39 }
  0x9e   : > { %2607 = vmatpush3.msra.mxu0 %v3407_v39  ;;  %2622 = vmatprep.mubr.msk.f32.mxu0 %vm516_vm1, %v3121_v26 }
  0x9f   : > { %2608 = vmatprep.subr.mxu0 %v3409_v55 }
  0xa0   : > { %2609 = vmatpush3.msra.mxu0 %v3409_v55 }
  0xa1   : > { %2610 = vmatprep.subr.mxu0 %v3416_v42 }
  0xa2   : > { %2611 = vmatpush3.msra.mxu0 %v3416_v42 }
  0xa3   : > { %2612 = vmatprep.subr.mxu0 %v3438_v56 }
  0xa4   : > { %2613 = vmatpush3.msra.mxu0 %v3438_v56 }
  0xa5   : > { %2614 = vmatprep.subr.mxu0 %v3440_v57 }
  0xa6   : > { %2615 = vmatpush3.msra.mxu0 %v3440_v57 }
  0xa7   : > { %2616 = vmatprep.subr.mxu0 %v3467_v5 }
  0xa8   : > { %2617 = vmatpush3.msra.mxu0 %v3467_v5 }
  0xa9   : > { %2618 = vmatprep.subr.mxu0 %v3469_v11 }
  0xaa   : > { %2619 = vmatpush3.msra.mxu0 %v3469_v11 }
  0xab   : > { %2620 = vmatprep.subr.mxu0 %v3477_v6 }
  0xac   : > { %2621 = vmatpush3.msra.mxu0 %v3477_v6 }
  0xad   : > { %2623 = vmatmul.mubr.msk.f32.vlgmr.msra.gmra.mxu0 %vm516_vm1, %v3164_v3 }
 0x11b   : > { %v2434_v26 = vpop.f32.mrf.mxu0 }
 0x11d   : > { %v589_v38 = vpop.f32.mrf.mxu0 }
 0x11e   : > { %2451 = vmatprep.mubr.msk.f32.mxu1 %vm516_vm1, %v589_v38 }
 0x11f   : > { %2452 = vmatmul.mubr.msk.f32.vlgmr.msra.gmra.mxu1 %vm516_vm1, %v2434_v26 }
 0x120   : > { %2474 = vmatpush3.msra.mxu1 %v3431_v54 }
 0x121   : > { %2475 = vmatprep.subr.mxu1 %v3451_v61 }
 0x122   : > { %2476 = vmatpush3.msra.mxu1 %v3451_v61 }
 0x123   : > { %2477 = vmatprep.subr.mxu1 %v3464_v4 }
 0x124   : > { %2478 = vmatpush3.msra.mxu1 %v3464_v4 }
 0x125   : > { %2479 = vmatprep.subr.mxu1 %v3483_v47 }
 0x126   : > { %2480 = vmatpush3.msra.mxu1 %v3483_v47 }
 0x127   : > { %2481 = vmatprep.subr.mxu1 %v3498_v9 }
 0x128   : > { %2482 = vmatpush3.msra.mxu1 %v3498_v9 }
 0x129   : > { %2483 = vmatprep.subr.mxu1 %v3513_v24 }
 0x12a   : > { %2484 = vmatpush3.msra.mxu1 %v3513_v24 }
 0x12b   : > { %v2472_v3 = vpop.f32.mrf.mxu0  ;;  %2485 = vmatprep.subr.mxu1 %v3548_v27 }
 0x12c   : > { %2486 = vmatpush3.msra.mxu1 %v3548_v27 }
 0x12d   : > { %v749_v46 = vpop.f32.mrf.mxu0  ;;  %2487 = vmatprep.subr.mxu1 %v3559_v34 }
 0x12e   : > { %2488 = vmatpush3.msra.mxu1 %v3559_v34  ;;  %2489 = vmatprep.mubr.msk.f32.mxu1 %vm516_vm1, %v749_v46 }
 0x12f   : > { %2490 = vmatmul.mubr.msk.f32.vlgmr.msra.gmra.mxu1 %vm516_vm1, %v2472_v3  ;;  %2511 = vmatprep.subr.mxu1 %v3431_v54 }
 0x130   : > { %2512 = vmatpush3.msra.mxu1 %v3431_v54 }
 0x131   : > { %2513 = vmatprep.subr.mxu1 %v3451_v61 }
 0x132   : > { %2514 = vmatpush3.msra.mxu1 %v3451_v61 }
 0x133   : > { %2515 = vmatprep.subr.mxu1 %v3464_v4 }
 0x134   : > { %2516 = vmatpush3.msra.mxu1 %v3464_v4 }
 0x135   : > { %2517 = vmatprep.subr.mxu1 %v3483_v47 }
 0x136   : > { %2518 = vmatpush3.msra.mxu1 %v3483_v47 }
 0x137   : > { %2519 = vmatprep.subr.mxu1 %v3498_v9 }
 0x138   : > { %2520 = vmatpush3.msra.mxu1 %v3498_v9 }
 0x139   : > { %2521 = vmatprep.subr.mxu1 %v3513_v24 }
 0x13a   : > { %2522 = vmatpush3.msra.mxu1 %v3513_v24 }
 0x13b   : > { %v2510_v48 = vpop.f32.mrf.mxu0  ;;  %2523 = vmatprep.subr.mxu1 %v3548_v27 }
 0x13c   : > { %2524 = vmatpush3.msra.mxu1 %v3548_v27 }
 0x13d   : > { %v1056_v63 = vpop.f32.mrf.mxu0  ;;  %2525 = vmatprep.subr.mxu1 %v3559_v34 }
 0x13e   : > { %2526 = vmatpush3.msra.mxu1 %v3559_v34  ;;  %2527 = vmatprep.mubr.msk.f32.mxu1 %vm516_vm1, %v1056_v63 }
 0x13f   : > { %2528 = vmatmul.mubr.msk.f32.vlgmr.msra.gmra.mxu1 %vm516_vm1, %v2510_v48  ;;  %2549 = vmatprep.subr.mxu1 %v3431_v54 }
 0x140   : > { %2550 = vmatpush3.msra.mxu1 %v3431_v54 }
 0x141   : > { %2551 = vmatprep.subr.mxu1 %v3451_v61 }
 0x142   : > { %2552 = vmatpush3.msra.mxu1 %v3451_v61 }
 0x143   : > { %2553 = vmatprep.subr.mxu1 %v3464_v4 }
 0x144   : > { %2554 = vmatpush3.msra.mxu1 %v3464_v4 }
 0x145   : > { %2555 = vmatprep.subr.mxu1 %v3483_v47 }
 0x146   : > { %2556 = vmatpush3.msra.mxu1 %v3483_v47 }
 0x147   : > { %2557 = vmatprep.subr.mxu1 %v3498_v9 }
 0x148   : > { %2558 = vmatpush3.msra.mxu1 %v3498_v9 }
 0x149   : > { %2559 = vmatprep.subr.mxu1 %v3513_v24 }
 0x14a   : > { %2560 = vmatpush3.msra.mxu1 %v3513_v24 }
 0x14b   : > { %v2548_v40 = vpop.f32.mrf.mxu0  ;;  %2561 = vmatprep.subr.mxu1 %v3548_v27 }
 0x14c   : > { %2562 = vmatpush3.msra.mxu1 %v3548_v27 }
 0x14d   : > { %v1215_v0 = vpop.f32.mrf.mxu0  ;;  %2563 = vmatprep.subr.mxu1 %v3559_v34 }
 0x14e   : > { %2564 = vmatpush3.msra.mxu1 %v3559_v34  ;;  %2565 = vmatprep.mubr.msk.f32.mxu1 %vm516_vm1, %v1215_v0 }
 0x14f   : > { %2566 = vmatmul.mubr.msk.f32.vlgmr.msra.gmra.mxu1 %vm516_vm1, %v2548_v40  ;;  %2587 = vmatprep.subr.mxu1 %v3431_v54 }
 0x150   : > { %2588 = vmatpush3.msra.mxu1 %v3431_v54 }
 0x151   : > { %2589 = vmatprep.subr.mxu1 %v3451_v61 }
 0x152   : > { %2590 = vmatpush3.msra.mxu1 %v3451_v61 }
 0x153   : > { %2591 = vmatprep.subr.mxu1 %v3464_v4 }
 0x154   : > { %2592 = vmatpush3.msra.mxu1 %v3464_v4 }
 0x155   : > { %2593 = vmatprep.subr.mxu1 %v3483_v47 }
 0x156   : > { %2594 = vmatpush3.msra.mxu1 %v3483_v47 }
 0x157   : > { %2595 = vmatprep.subr.mxu1 %v3498_v9 }
 0x158   : > { %2596 = vmatpush3.msra.mxu1 %v3498_v9 }
 0x159   : > { %2597 = vmatprep.subr.mxu1 %v3513_v24 }
 0x15a   : > { %2598 = vmatpush3.msra.mxu1 %v3513_v24 }
 0x15b   : > { %2599 = vmatprep.subr.mxu1 %v3548_v27 }
 0x15c   : > { %2600 = vmatpush3.msra.mxu1 %v3548_v27 }
 0x15d   : > { %v2586_v12 = vpop.f32.mrf.mxu0  ;;  %2601 = vmatprep.subr.mxu1 %v3559_v34 }
 0x15e   : > { %2602 = vmatpush3.msra.mxu1 %v3559_v34 }
 0x15f   : > { %v1521_v13 = vpop.f32.mrf.mxu0  ;;  %2625 = vmatprep.subr.mxu1 %v3431_v54 }
 0x160   : > { %2603 = vmatprep.mubr.msk.f32.mxu1 %vm516_vm1, %v1521_v13 }
 0x161   : > { %2604 = vmatmul.mubr.msk.f32.vlgmr.msra.gmra.mxu1 %vm516_vm1, %v2586_v12 }
 0x162   : > { %2626 = vmatpush3.msra.mxu1 %v3431_v54 }
 0x163   : > { %2627 = vmatprep.subr.mxu1 %v3451_v61 }
 0x164   : > { %2628 = vmatpush3.msra.mxu1 %v3451_v61 }
 0x165   : > { %2629 = vmatprep.subr.mxu1 %v3464_v4 }
 0x166   : > { %2630 = vmatpush3.msra.mxu1 %v3464_v4 }
 0x167   : > { %2631 = vmatprep.subr.mxu1 %v3483_v47 }
 0x168   : > { %2632 = vmatpush3.msra.mxu1 %v3483_v47 }
 0x169   : > { %2633 = vmatprep.subr.mxu1 %v3498_v9 }
 0x16a   : > { %2634 = vmatpush3.msra.mxu1 %v3498_v9 }
 0x16b   : > { %2635 = vmatprep.subr.mxu1 %v3513_v24 }
 0x16c   : > { %2636 = vmatpush3.msra.mxu1 %v3513_v24 }
 0x16d   : > { %v2624_v14 = vpop.f32.mrf.mxu0  ;;  %2637 = vmatprep.subr.mxu1 %v3548_v27 }
 0x16e   : > { %2638 = vmatpush3.msra.mxu1 %v3548_v27 }
 0x16f   : > { %v1679_v15 = vpop.f32.mrf.mxu0  ;;  %2639 = vmatprep.subr.mxu1 %v3559_v34 }
 0x170   : > { %2640 = vmatpush3.msra.mxu1 %v3559_v34  ;;  %2641 = vmatprep.mubr.msk.f32.mxu1 %vm516_vm1, %v1679_v15 }
 0x171   : > { %2642 = vmatmul.mubr.msk.f32.vlgmr.msra.gmra.mxu1 %vm516_vm1, %v2624_v14 }
 0x1df   : > { %v2453_v16 = vpop.f32.mrf.mxu1 }
 0x1e0   : > { %2096 = vst.msk [vmem:[%s3675_s7 + $0x28] sm:$0xff] %vm680_vm2, %v2453_v16 }
 0x1e1   : > { %v670_v18 = vpop.f32.mrf.mxu1 }
 0x1e2   : > { %2095 = vst.msk [vmem:[%s3675_s7 + $0x20] sm:$0xff] %vm680_vm2, %v670_v18 }
 0x1ef   : > { %v2491_v51 = vpop.f32.mrf.mxu1 }
 0x1f0   : > { %2102 = vst.msk [vmem:[%s3681_s17 + $0x28] sm:$0xff] %vm680_vm2, %v2491_v51 }
 0x1f1   : > { %v830_v21 = vpop.f32.mrf.mxu1 }
 0x1f2   : > { %2101 = vst.msk [vmem:[%s3681_s17 + $0x20] sm:$0xff] %vm680_vm2, %v830_v21 }
 0x1ff   : > { %v2529_v22 = vpop.f32.mrf.mxu1 }
 0x200   : > { %2172 = vst.msk [vmem:[%s3675_s7 + $0x18] sm:$0xff] %vm680_vm2, %v2529_v22 }
 0x201   : > { %v1137_v23 = vpop.f32.mrf.mxu1 }
 0x202   : > { %2171 = vst.msk [vmem:[%s3675_s7 + $0x10] sm:$0xff] %vm680_vm2, %v1137_v23 }
 0x20f   : > { %v2567_v17 = vpop.f32.mrf.mxu1 }
 0x210   : > { %2178 = vst.msk [vmem:[%s3681_s17 + $0x18] sm:$0xff] %vm680_vm2, %v2567_v17 }
 0x211   : > { %v1296_v28 = vpop.f32.mrf.mxu1 }
 0x212   : > { %2177 = vst.msk [vmem:[%s3681_s17 + $0x10] sm:$0xff] %vm680_vm2, %v1296_v28 }
 0x221   : > { %v2605_v29 = vpop.f32.mrf.mxu1 }
 0x222   : > { %1612 = vst.msk [vmem:[%s3675_s7 + $0x8] sm:$0xff] %vm680_vm2, %v2605_v29 }
 0x223   : > { %v1602_v30 = vpop.f32.mrf.mxu1 }
 0x224   : > { %1611 = vst.msk [vmem:[%s3675_s7] sm:$0xff] %vm680_vm2, %v1602_v30 }
 0x231   : > { %v2643_v32 = vpop.f32.mrf.mxu1 }
 0x232   : > { %1770 = vst.msk [vmem:[%s3681_s17 + $0x8] sm:$0xff] %vm680_vm2, %v2643_v32 }
 0x233   : > { %v1760_v52 = vpop.f32.mrf.mxu1 }
 0x234   : > { %1769 = vst.msk [vmem:[%s3681_s17] sm:$0xff] %vm680_vm2, %v1760_v52 }
 0x235   : > { %s2650_s14 = smul.u32 1536, %s2909_s24  ;;  %s1807_s13 = sshll.u32 %s3126_s8, 4  ;;  %s1808_s13 = int_to_ptr.vmem [resolvable:$true] %s1807_s13 }
 0x236   : > { %s2923_s0 = smov 1536   ;;  %s2924_s27 = smov 3072  }
 0x237   : > { %s1796_s23 = scalar_lea.hbm %s3819_s4, %s2650_s14  ;;  %2657 = sst [smem:[#allocation12]] (%p3024_p9), %s2923_s0 }
 0x238   : > { %2658 = sst [smem:[#allocation12 + $0x1]] (%p3024_p9), %s2924_s27  ;;  %s2925_s11 = smov 24  }
 0x239   : > { %2659 = sst [smem:[#allocation12 + $0x2]] (%p3024_p9), %s2925_s11  ;;  %s2926_s9 = smov 64  }
 0x23a   : > { %2660 = sst [smem:[#allocation12 + $0x3]] (%p3024_p9), %s2926_s9  ;;  %s2927_s8 = smov 4  }
 0x23b   : > { %2661 = sst [smem:[#allocation12 + $0x4]] (%p3024_p9), %s2926_s9  ;;  %s2928_s16 = smov 131072  }
 0x23c   : > { %2662 = sst [smem:[#allocation12 + $0x5]] (%p3024_p9), %s2927_s8  ;;  %s2929_s18 = smov 0  }
 0x23d   : > { %2663 = dma.general (%p3024_p9), %s1808_s13, 3072, %s1796_s23, %s1772_s19, %s2928_s16, [#allocation12], %s2929_s18, 0  }
 0x23e   : > { %s2651_s20 = smul.u32 768, %s2909_s24  ;;  %s1838_s28 = sshll.u32 %s3675_s7, 4  ;;  %s3729_s28 = int_to_ptr.vmem [resolvable:$true] %s1838_s28 }
 0x23f   : > { %s2803_s12 = scalar_lea.vmem %s3729_s28, 768  ;;  %s2930_s19 = smov [#allocation8]  }
 0x240   : > { %s3736_s15 = scalar_lea.hbm %s3820_s5, %s2651_s20  ;;  %p2804_p8 = scmp.ne.s32.totalorder %s3729_s28, %s2803_s12 }
 0x241   : > { %s2807_s13 = sshll.u32 %s2930_s19, 4  ;;  %s2808_s13 = int_to_ptr.vmem [resolvable:$false] %s2807_s13 }
 0x242   : > { %p2805_p0 = pnand %p2804_p8, %p3024_p9  ;;  %s2809_s7 = scalar_lea.vmem %s2808_s13, 1536 }
 0x243   : > { %p2810_p4 = scmp.lt.s32.totalorder %s3729_s28, %s2808_s13  ;;  %p2811_p5 = scmp.lt.s32.totalorder %s2809_s7, %s2803_s12 }
 0x244   : > { %p2806_p2 = pneg %p2805_p0 }
 0x245   : > { %p2812_p6 = por %p2811_p5, %p2810_p4 }
 0x247   : > { %p2813_p7 = pnand %p2812_p6, %p2806_p2 }
 0x249   : > { %2816 = shalt.err (!%p2813_p7)
}
 0x24a   : > { %s2817_s23 = scalar_lea.hbm %s3736_s15, 768  ;;  %s2821_s11 = scalar_lea.hbm %s3820_s5, 1536 }
 0x24b   : > { %p2818_p10 = scmp.ne.s32.totalorder %s3736_s15, %s2817_s23  ;;  %p2822_p3 = scmp.lt.s32.totalorder %s3736_s15, %s3820_s5 }
 0x24c   : > { %p2823_p8 = scmp.lt.s32.totalorder %s2821_s11, %s2817_s23 }
 0x24d   : > { %p2819_p1 = pnand %p2818_p10, %p3024_p9 }
 0x24e   : > { %p2824_p0 = por %p2823_p8, %p2822_p3 }
 0x24f   : > { %p2820_p13 = pneg %p2819_p1 }
 0x251   : > { %p2825_p2 = pnand %p2824_p0, %p2820_p13 }
 0x253   : > { %2828 = shalt.err (!%p2825_p2)
}
 0x254   : > { %s2931_s16 = smov 128   ;;  %s2932_s18 = smov 8  }
 0x255   : > { %2664 = dma.vmem_to_hbm [thread:$0]  (%p3024_p9), %s3729_s28, 768, %s3736_s15, %s3706_s30, %s2931_s16, %s2931_s16, %s2932_s18  }
 0x256   : > { %s3767_s12 = scalar_lea.hbm %s3821_s6, %s2651_s20  ;;  %s1856_s19 = sshll.u32 %s3681_s17, 4  ;;  %s1857_s19 = int_to_ptr.vmem [resolvable:$true] %s1856_s19 }
 0x257   : > { %s2829_s13 = scalar_lea.vmem %s1857_s19, 768  ;;  %s2933_s7 = smov [#allocation10]  }
 0x258   : > { %p2830_p4 = scmp.ne.s32.totalorder %s1857_s19, %s2829_s13  ;;  %s2833_s23 = sshll.u32 %s2933_s7, 4  ;;  %s2834_s23 = int_to_ptr.vmem [resolvable:$false] %s2833_s23 }
 0x259   : > { %s2835_s0 = scalar_lea.vmem %s2834_s23, 1536  ;;  %p2836_p7 = scmp.lt.s32.totalorder %s1857_s19, %s2834_s23 }
 0x25a   : > { %p2831_p5 = pnand %p2830_p4, %p3024_p9  ;;  %p2837_p10 = scmp.lt.s32.totalorder %s2835_s0, %s2829_s13 }
 0x25c   : > { %p2832_p6 = pneg %p2831_p5  ;;  %p2838_p1 = por %p2837_p10, %p2836_p7 }
 0x25e   : > { %p2839_p13 = pnand %p2838_p1, %p2832_p6 }
 0x260   : > { %2842 = shalt.err (!%p2839_p13)
}
 0x261   : > { %s2843_s24 = scalar_lea.hbm %s3767_s12, 768  ;;  %s2847_s28 = scalar_lea.hbm %s3821_s6, 1536 }
 0x262   : > { %p2844_p3 = scmp.ne.s32.totalorder %s3767_s12, %s2843_s24  ;;  %p2848_p2 = scmp.lt.s32.totalorder %s3767_s12, %s3821_s6 }
 0x263   : > { %p2849_p4 = scmp.lt.s32.totalorder %s2847_s28, %s2843_s24 }
 0x264   : > { %p2845_p8 = pnand %p2844_p3, %p3024_p9 }
 0x265   : > { %p2850_p5 = por %p2849_p4, %p2848_p2 }
 0x266   : > { %p2846_p0 = pneg %p2845_p8 }
 0x268   : > { %p2851_p6 = pnand %p2850_p5, %p2846_p0 }
 0x26a   : > { %2854 = shalt.err (!%p2851_p6)
}
 0x26b   : > { %2665 = dma.vmem_to_hbm [thread:$0]  (%p3024_p9), %s1857_s19, 768, %s3767_s12, %s3706_s30, %s2931_s16, %s2931_s16, %s2932_s18  }
 0x26c PF: > { %s1871_s9 = sand.u32 1, %s2897_s21   ;;  %p2677_p7 = pnand %p2039_p12, %p3033_p11 }
 0x26d   : > { %s1872_s8 = scalar_lea.sflag [#allocation4], %s1871_s9 }
 0x26e   : > { %p2678_p10 = pneg %p2677_p7 }
 0x270   : > { %2888 = dma.done.wait (%p2678_p10), %s1872_s8, 3072  }
 0x271   : > { %2890 = vsyncadd (%p2678_p10), %s1872_s8, 4294964224  ;;  %s3841_s10 = sadd.s32 4294967294, %s2917_s26  }
 0x272   : > { %s1880_s29 = sand.u32 1, %s3841_s10  }
 0x273   : > { %s1881_s14 = scalar_lea.sflag [#allocation9], %s1880_s29 }
 0x274   : > { %2892 = dma.done.wait (%p2678_p10), %s1881_s14, 1536  }
 0x275   : > { %2894 = vsyncadd (%p2678_p10), %s1881_s14, 4294965760  ;;  %s29_s26 = sadd.s32 1, %s2917_s26   ;;  %s3842_s30 = sld [smem:[#allocation17_spill]] }
 0x276   : > { %p26_p9 = scmp.ge.s32.totalorder %s29_s26, 4   ;;  %s3843_s23 = sld [smem:[#allocation19_spill]] }
 0x277   : > { %s3844_s16 = sld [smem:[#allocation18_spill]]  ;;  %s3845_s21 = smov %s2901_s22 }
 0x278   : > { %s3847_s24 = smov %s2913_s25 }
 0x279   :  { %28 = sbr.rel (!%p26_p9) target bundleno = 12 (0xc), region = 144 }
 0x27b   : > { %s3846_s22 = smov %s3842_s30 }
 0x27d   : > { %s3848_s25 = smov %s3844_s16 }
 0x27e   :  { %1895 = vsyncpa [#allocation3], 1 }
 0x27f   :  { %1897 = vsyncpa [#allocation3 + $0x1], 1 }
 0x280   :  { %1898 = vsyncpa [#allocation6], 1 }
 0x281   :  { %1900 = vsyncpa [#allocation6 + $0x1], 1 }
 0x282   :  { %1901 = vsyncpa [#allocation4], 1 }
 0x283   :  { %1903 = vsyncpa [#allocation4 + $0x1], 1 }
 0x284   :  { %1904 = vsyncpa [#allocation9], 1 }
 0x285   :  { %1906 = vsyncpa [#allocation9 + $0x1], 1 }

</bundles_post_ra>
